<compile_context>
chip_gen: v6e
topology: v6e:2x2x1
jax: 0.10.0
libtpu: 0.0.40
codegen_flags: <defaults>
</compile_context>

<pallas_src>
import jax
import jax.numpy as jnp
from jax import lax
from jax.experimental import pallas as pl
from jax.experimental.pallas import tpu as pltpu


# -----------------------------------------------------------------------------
# Kernel: one grid point = one graph; all recall steps run in an unrolled loop.
# -----------------------------------------------------------------------------
def _rgat_stack_kernel(cell_ids_ref,                   # SMEM scalar-prefetch: cell id per step
                       h0_ref, adj_ref,                # per-graph inputs
                       whf_ref, wzrn_ref, bzrn_ref, un_ref, dmask_ref,   # full weight stacks (VMEM-resident)
                       red_out_ref, h_out_ref):        # per-graph outputs of the last step
    n_steps = cell_ids_ref.shape[0]
    _, N, H = h0_ref.shape

    h0 = h0_ref[0]                                     # [N, H]
    adj = adj_ref[0]                                   # [N, N], adj[i, j] = 1 iff edge j -> i
    on_edge = adj > 0
    dmask = dmask_ref[...]                             # [1, H] shared feature-dropout mask

    def step(s, carry):
        _, h = carry
        cid = cell_ids_ref[s]                          # dynamic cell select, no DMA
        w_h = whf_ref[cid]                             # [H, Fp]  (Fp = 3H+2 padded to 128 lanes)
        w_zrn = wzrn_ref[cid]                          # [H, 3H]
        b_zrn = bzrn_ref[cid]                          # [1, 3H]
        u_n = un_ref[cid]                              # [H, H]

        # ---- fused h-side matmul: wh, GRU h-partials, attention projections ----
        fused = jnp.dot(h, w_h, preferred_element_type=jnp.float32)       # [N, Fp]
        wh = fused[:, 0:H]                             # message_func output  (= h @ Wmsg)
        h_z = fused[:, H:2 * H]                        # h @ Uz
        h_r = fused[:, 2 * H:3 * H]                    # h @ Ur
        att_dst = fused[:, 3 * H:3 * H + 1]            # wh @ a_dst  (folded: h @ (Wmsg a_dst))
        att_src = fused[:, 3 * H + 1:3 * H + 2]        # wh @ a_src

        # ---- reduce_func: masked GAT-attention softmax + weighted aggregation --
        logits = att_dst + att_src.T                                       # [N_dst, N_src]
        logits = jnp.where(logits > 0, logits, 0.2 * logits)               # leaky_relu(0.2)
        m = jnp.max(jnp.where(on_edge, logits, jnp.float32(-1e9)),
                    axis=-1, keepdims=True)                                # [N, 1]
        p = jnp.where(on_edge, jnp.exp(logits - m), 0.0)                   # [N, N]
        denom = jnp.sum(p, axis=-1, keepdims=True)                         # [N, 1]

        # Aggregate first, normalize afterwards (exact divide, per review).
        red = jnp.dot(p, wh, preferred_element_type=jnp.float32)           # [N, H]
        red = red / (denom + jnp.float32(1e-9))
        red = red * dmask

        # ---- apply_node_func: GRU update; red-side gates fused into one matmul --
        gates = jnp.dot(red, w_zrn, preferred_element_type=jnp.float32) + b_zrn   # [N, 3H]
        z = jax.nn.sigmoid(gates[:, 0:H] + h_z)
        r = jax.nn.sigmoid(gates[:, H:2 * H] + h_r)
        n = jnp.tanh(gates[:, 2 * H:3 * H]
                     + jnp.dot(r * h, u_n, preferred_element_type=jnp.float32))
        h_new = (1.0 - z) * n + z * h
        return red, h_new

    red0 = jnp.zeros((N, H), jnp.float32)              # init_node_states: red = 0
    red, h_new = lax.fori_loop(0, n_steps, step, (red0, h0), unroll=True)

    red_out_ref[0] = red
    h_out_ref[0] = h_new


# -----------------------------------------------------------------------------
# Wrapper: ONE pallas_call for B independent graphs and an arbitrary cell sequence.
# -----------------------------------------------------------------------------
@jax.jit
def _rgat_stack_call(cell_ids, h0, adj, wh_fused, w_zrn, b_zrn, u_n, dmask):
    B, N, H = h0.shape
    C, _, Fp = wh_fused.shape
    n_steps = cell_ids.shape[0]

    grid_spec = pltpu.PrefetchScalarGridSpec(
        num_scalar_prefetch=1,
        grid=(B,),                                     # parallel over graphs (v7x: 2nd TC)
        in_specs=[
            pl.BlockSpec((1, N, H), lambda b, ids: (b, 0, 0)),          # h0
            pl.BlockSpec((1, N, N), lambda b, ids: (b, 0, 0)),          # adj
            pl.BlockSpec((C, H, Fp), lambda b, ids: (0, 0, 0)),         # fused h-side weights
            pl.BlockSpec((C, H, 3 * H), lambda b, ids: (0, 0, 0)),      # [Wz Wr Wn]
            pl.BlockSpec((C, 1, 3 * H), lambda b, ids: (0, 0, 0)),      # [bz br bn]
            pl.BlockSpec((C, H, H), lambda b, ids: (0, 0, 0)),          # Un
            pl.BlockSpec((1, H), lambda b, ids: (0, 0)),                # dropout mask
        ],
        out_specs=[
            pl.BlockSpec((1, N, H), lambda b, ids: (b, 0, 0)),          # red (last step)
            pl.BlockSpec((1, N, H), lambda b, ids: (b, 0, 0)),          # h_new (last step)
        ],
    )

    flops_step = (2 * N * H * Fp           # fused h-side matmul
                  + 6 * N * N              # logits + softmax elementwise
                  + 2 * N * N * H          # aggregation matmul
                  + 2 * N * H * 3 * H      # red-side GRU gate matmul
                  + 2 * N * H * H          # (r*h) @ Un
                  + 12 * N * H)            # GRU elementwise
    cost = pl.CostEstimate(
        flops=int(B * n_steps * flops_step),
        transcendentals=int(B * n_steps * (N * N + 3 * N * H)),
        bytes_accessed=int(4 * (cell_ids.size + h0.size + adj.size + wh_fused.size
                                + w_zrn.size + b_zrn.size + u_n.size + dmask.size
                                + 2 * B * N * H)),
    )

    red, h_new = pl.pallas_call(
        _rgat_stack_kernel,
        out_shape=(jax.ShapeDtypeStruct((B, N, H), jnp.float32),
                   jax.ShapeDtypeStruct((B, N, H), jnp.float32)),
        grid_spec=grid_spec,
        compiler_params=pltpu.CompilerParams(dimension_semantics=("parallel",)),
        cost_estimate=cost,
    )(cell_ids, h0, adj, wh_fused, w_zrn, b_zrn, u_n, dmask)
    return red, h_new


def stack_cell_params(cell_params):
    """Pre-stack per-cell weights once and build the fused h-side weight.

    wh_fused[c] = [Wmsg | Uz | Ur | Wmsg@a_dst | Wmsg@a_src | 0-pad]  -> [H, Fp] (Fp = 128-mult)
    w_zrn[c]    = [Wz | Wr | Wn]                                       -> [H, 3H]
    b_zrn[c]    = [bz | br | bn]                                       -> [1, 3H]
    """
    H = cell_params[0]["w_msg"].shape[0]
    F = 3 * H + 2
    Fp = ((F + 127) // 128) * 128
    whf, wzrn, bzrn, un = [], [], [], []
    for p in cell_params:
        a_dst_eff = p["w_msg"] @ p["a_dst"]                               # [H, 1]
        a_src_eff = p["w_msg"] @ p["a_src"]                               # [H, 1]
        fused = jnp.concatenate([p["w_msg"], p["u_z"], p["u_r"],
                                 a_dst_eff, a_src_eff], axis=1)           # [H, 3H+2]
        whf.append(jnp.pad(fused, ((0, 0), (0, Fp - F))))
        wzrn.append(jnp.concatenate([p["w_z"], p["w_r"], p["w_n"]], axis=1))
        bzrn.append(jnp.concatenate([p["b_z"], p["b_r"], p["b_n"]], axis=1))
        un.append(p["u_n"])
    return {"wh_fused": jnp.stack(whf), "w_zrn": jnp.stack(wzrn),
            "b_zrn": jnp.stack(bzrn), "u_n": jnp.stack(un)}


def rgat_cell_stack_forward(h, adj, stacked, dropout_mask, step=0):
    """Equivalent of RGATCellStack.forward(g, step): one update_all with cells[step]."""
    cell_ids = jnp.asarray([step], dtype=jnp.int32)
    return _rgat_stack_call(cell_ids, h, adj, stacked["wh_fused"], stacked["w_zrn"],
                            stacked["b_zrn"], stacked["u_n"], dropout_mask)


def rgat_cell_stack_run(h, adj, stacked, dropout_mask, steps):
    """Run a whole sequence of cells (the recall loop) fused inside ONE pallas_call."""
    cell_ids = jnp.asarray(list(steps), dtype=jnp.int32)
    return _rgat_stack_call(cell_ids, h, adj, stacked["wh_fused"], stacked["w_zrn"],
                            stacked["b_zrn"], stacked["u_n"], dropout_mask)


# -----------------------------------------------------------------------------
# Pure-JAX reference (mirrors the original per-step math) for correctness check.
# -----------------------------------------------------------------------------
def _rgat_reference(h, adj, cell_params, dmask, steps):
    red = jnp.zeros_like(h)
    for s in steps:
        p = cell_params[s]
        wh = h @ p["w_msg"]
        att_src = wh @ p["a_src"]
        att_dst = wh @ p["a_dst"]
        logits = att_dst + att_src.T
        logits = jnp.where(logits > 0, logits, 0.2 * logits)
        masked = jnp.where(adj > 0, logits, jnp.float32(-1e9))
        m = jnp.max(masked, axis=-1, keepdims=True)
        pe = jnp.exp(masked - m) * adj
        denom = jnp.sum(pe, axis=-1, keepdims=True)
        alpha = pe / (denom + 1e-9)
        red = (alpha @ wh) * dmask
        z = jax.nn.sigmoid(red @ p["w_z"] + h @ p["u_z"] + p["b_z"])
        r = jax.nn.sigmoid(red @ p["w_r"] + h @ p["u_r"] + p["b_r"])
        n = jnp.tanh(red @ p["w_n"] + (r * h) @ p["u_n"] + p["b_n"])
        h = (1.0 - z) * n + z * h
    return red, h


def init_cell_params(key, hdim, num_cells):
    """Deterministic synthetic parameters for each RGAT cell in the stack."""
    cells = []
    for c in range(num_cells):
        k = jax.random.fold_in(key, c)
        ks = jax.random.split(k, 12)
        scale = 0.1
        cells.append({
            "w_msg": scale * jax.random.normal(ks[0], (hdim, hdim), jnp.float32),
            "a_src": scale * jax.random.normal(ks[1], (hdim, 1), jnp.float32),
            "a_dst": scale * jax.random.normal(ks[2], (hdim, 1), jnp.float32),
            "w_z":   scale * jax.random.normal(ks[3], (hdim, hdim), jnp.float32),
            "u_z":   scale * jax.random.normal(ks[4], (hdim, hdim), jnp.float32),
            "b_z":   jnp.zeros((1, hdim), jnp.float32),
            "w_r":   scale * jax.random.normal(ks[5], (hdim, hdim), jnp.float32),
            "u_r":   scale * jax.random.normal(ks[6], (hdim, hdim), jnp.float32),
            "b_r":   jnp.zeros((1, hdim), jnp.float32),
            "w_n":   scale * jax.random.normal(ks[7], (hdim, hdim), jnp.float32),
            "u_n":   scale * jax.random.normal(ks[8], (hdim, hdim), jnp.float32),
            "b_n":   jnp.zeros((1, hdim), jnp.float32),
        })
    return cells


if __name__ == "__main__":
    key = jax.random.PRNGKey(0)
    B = 2           # independent graphs (batch; 'parallel' grid axis)
    N = 16          # nodes per (dense) graph
    H = 32          # cell.hdim
    NUM_CELLS = 2   # len(self.cells)
    FEAT_DROP = 0.0

    k_adj, k_h, k_par = jax.random.split(key, 3)

    # Random directed graphs as dense masks adj[b, i, j] = edge j -> i, plus self loops.
    adj = (jax.random.uniform(k_adj, (B, N, N)) < 0.3).astype(jnp.float32)
    adj = jnp.maximum(adj, jnp.eye(N, dtype=jnp.float32))

    # init_node_states gives zeros; use small random states so the math is exercised.
    h = 0.1 * jax.random.normal(k_h, (B, N, H), jnp.float32)

    cell_params = init_cell_params(k_par, H, NUM_CELLS)
    stacked = stack_cell_params(cell_params)

    # reset_dropout(): with feat_drop = 0.0 the mask is all-ones, clamped at 1.
    # TODO(synk): for feat_drop > 0 a Bernoulli-sampled mask would be needed (the original
    # buffer is shared across cells); here it is the deterministic all-ones buffer.
    dropout_mask = jnp.minimum(jnp.ones((1, H), jnp.float32) / (1.0 - FEAT_DROP), 1.0)

    # --- Fused path: the whole recall loop (all cells) in ONE pallas_call. -----
    red, state = rgat_cell_stack_run(h, adj, stacked, dropout_mask, range(NUM_CELLS))
    red = jax.block_until_ready(red)
    state = jax.block_until_ready(state)

    # --- Module-forward path: one update_all per step, chained in Python. ------
    red_a, state_a = rgat_cell_stack_forward(h, adj, stacked, dropout_mask, step=0)
    red_b, state_b = rgat_cell_stack_forward(state_a, adj, stacked, dropout_mask, step=1)
    red_b = jax.block_until_ready(red_b)
    state_b = jax.block_until_ready(state_b)

    # --- Checks against the pure-JAX reference. ---------------------------------
    assert red.shape == (B, N, H) and state.shape == (B, N, H)
    assert bool(jnp.all(jnp.isfinite(red))) and bool(jnp.all(jnp.isfinite(state)))
    for b in range(B):
        red_ref, state_ref = _rgat_reference(h[b], adj[b], cell_params, dropout_mask,
                                             range(NUM_CELLS))
        assert bool(jnp.allclose(red[b], red_ref, rtol=1e-2, atol=1e-2))
        assert bool(jnp.allclose(state[b], state_ref, rtol=1e-2, atol=1e-2))
    assert bool(jnp.allclose(state_b, state, rtol=1e-2, atol=1e-2))
    assert bool(jnp.allclose(red_b, red, rtol=1e-2, atol=1e-2))
    print("KERNEL_OK")
</pallas_src>

<mosaic_0001>
module attributes {stable_mosaic.version = 11 : i64} {
  func.func @_rgat_stack_kernel(%arg0: i32, %arg1: memref<2xi32, #tpu.memory_space<smem>>, %arg2: memref<1x16x32xf32, #tpu.memory_space<vmem>>, %arg3: memref<1x16x16xf32, #tpu.memory_space<vmem>>, %arg4: memref<2x32x128xf32, #tpu.memory_space<vmem>>, %arg5: memref<2x32x96xf32, #tpu.memory_space<vmem>>, %arg6: memref<2x1x96xf32, #tpu.memory_space<vmem>>, %arg7: memref<2x32x32xf32, #tpu.memory_space<vmem>>, %arg8: memref<1x32xf32, #tpu.memory_space<vmem>>, %arg9: memref<1x16x32xf32, #tpu.memory_space<vmem>>, %arg10: memref<1x16x32xf32, #tpu.memory_space<vmem>>) attributes {dimension_semantics = [#tpu.dimension_semantics<parallel>], iteration_bounds = array<i64: 2>, scalar_prefetch = 1 : i64, scratch_operands = 0 : i64, tpu.core_type = #tpu.core_type<tc>, window_params = [{transform_indices = @transform_0, window_bounds = array<i64: 1, 16, 32>}, {transform_indices = @transform_1, window_bounds = array<i64: 1, 16, 16>}, {pipeline_mode = #tpu.pipeline_mode<synchronous>, transform_indices = @transform_2, window_bounds = array<i64: 2, 32, 128>}, {pipeline_mode = #tpu.pipeline_mode<synchronous>, transform_indices = @transform_3, window_bounds = array<i64: 2, 32, 96>}, {pipeline_mode = #tpu.pipeline_mode<synchronous>, transform_indices = @transform_4, window_bounds = array<i64: 2, 1, 96>}, {pipeline_mode = #tpu.pipeline_mode<synchronous>, transform_indices = @transform_5, window_bounds = array<i64: 2, 32, 32>}, {pipeline_mode = #tpu.pipeline_mode<synchronous>, transform_indices = @transform_6, window_bounds = array<i64: 1, 32>}, {transform_indices = @transform_7, window_bounds = array<i64: 1, 16, 32>}, {transform_indices = @transform_8, window_bounds = array<i64: 1, 16, 32>}]} {
    %c0 = arith.constant 0 : index
    %c0_0 = arith.constant 0 : index
    %c0_1 = arith.constant 0 : index
    %0 = vector.load %arg2[%c0, %c0_0, %c0_1] : memref<1x16x32xf32, #tpu.memory_space<vmem>>, vector<1x16x32xf32>
    %1 = vector.shape_cast %0 : vector<1x16x32xf32> to vector<16x32xf32>
    %c0_2 = arith.constant 0 : index
    %c0_3 = arith.constant 0 : index
    %c0_4 = arith.constant 0 : index
    %2 = vector.load %arg3[%c0_2, %c0_3, %c0_4] : memref<1x16x16xf32, #tpu.memory_space<vmem>>, vector<1x16x16xf32>
    %3 = vector.shape_cast %2 : vector<1x16x16xf32> to vector<16x16xf32>
    %cst = arith.constant 0.000000e+00 : f32
    %4 = vector.broadcast %cst : f32 to vector<16x16xf32>
    %5 = arith.cmpf ogt, %3, %4 : vector<16x16xf32>
    %c0_5 = arith.constant 0 : index
    %c0_6 = arith.constant 0 : index
    %6 = vector.load %arg8[%c0_5, %c0_6] : memref<1x32xf32, #tpu.memory_space<vmem>>, vector<1x32xf32>
    %cst_7 = arith.constant 0.000000e+00 : f32
    %7 = vector.broadcast %cst_7 : f32 to vector<16x32xf32>
    %c0_i32 = arith.constant 0 : i32
    %8 = arith.index_cast %c0_i32 : i32 to index
    %9 = memref.load %arg1[%8] : memref<2xi32, #tpu.memory_space<smem>>
    %10 = arith.index_cast %9 : i32 to index
    %c0_8 = arith.constant 0 : index
    %c0_9 = arith.constant 0 : index
    %11 = vector.load %arg4[%10, %c0_8, %c0_9] : memref<2x32x128xf32, #tpu.memory_space<vmem>>, vector<1x32x128xf32>
    %12 = vector.shape_cast %11 : vector<1x32x128xf32> to vector<32x128xf32>
    %13 = arith.index_cast %9 : i32 to index
    %c0_10 = arith.constant 0 : index
    %c0_11 = arith.constant 0 : index
    %14 = vector.load %arg5[%13, %c0_10, %c0_11] : memref<2x32x96xf32, #tpu.memory_space<vmem>>, vector<1x32x96xf32>
    %15 = vector.shape_cast %14 : vector<1x32x96xf32> to vector<32x96xf32>
    %16 = arith.index_cast %9 : i32 to index
    %c0_12 = arith.constant 0 : index
    %c0_13 = arith.constant 0 : index
    %17 = vector.load %arg6[%16, %c0_12, %c0_13] : memref<2x1x96xf32, #tpu.memory_space<vmem>>, vector<1x1x96xf32>
    %18 = vector.shape_cast %17 : vector<1x1x96xf32> to vector<1x96xf32>
    %19 = arith.index_cast %9 : i32 to index
    %c0_14 = arith.constant 0 : index
    %c0_15 = arith.constant 0 : index
    %20 = vector.load %arg7[%19, %c0_14, %c0_15] : memref<2x32x32xf32, #tpu.memory_space<vmem>>, vector<1x32x32xf32>
    %21 = vector.shape_cast %20 : vector<1x32x32xf32> to vector<32x32xf32>
    %cst_16 = arith.constant dense<0.000000e+00> : vector<16x128xf32>
    %22 = tpu.matmul %1, %12, %cst_16 {dimension_numbers = #tpu.dot_dimension_numbers<[1], [0], [0], [1], [0, 0, 1, 1], [], []>} : vector<16x32xf32>, vector<32x128xf32>, vector<16x128xf32> -> vector<16x128xf32>
    %23 = vector.extract_strided_slice %22 {offsets = [0, 0], sizes = [16, 32], strides = [1, 1]} : vector<16x128xf32> to vector<16x32xf32>
    %24 = vector.extract_strided_slice %22 {offsets = [0, 32], sizes = [16, 32], strides = [1, 1]} : vector<16x128xf32> to vector<16x32xf32>
    %25 = vector.extract_strided_slice %22 {offsets = [0, 64], sizes = [16, 32], strides = [1, 1]} : vector<16x128xf32> to vector<16x32xf32>
    %26 = vector.extract_strided_slice %22 {offsets = [0, 96], sizes = [16, 1], strides = [1, 1]} : vector<16x128xf32> to vector<16x1xf32>
    %27 = vector.extract_strided_slice %22 {offsets = [0, 97], sizes = [16, 1], strides = [1, 1]} : vector<16x128xf32> to vector<16x1xf32>
    %28 = tpu.transpose %27, [1, 0] : vector<16x1xf32> -> vector<1x16xf32>
    %29 = vector.broadcast %26 : vector<16x1xf32> to vector<16x16xf32>
    %30 = vector.broadcast %28 : vector<1x16xf32> to vector<16x16xf32>
    %31 = arith.addf %29, %30 : vector<16x16xf32>
    %cst_17 = arith.constant 0.000000e+00 : f32
    %32 = vector.broadcast %cst_17 : f32 to vector<16x16xf32>
    %33 = arith.cmpf ogt, %31, %32 : vector<16x16xf32>
    %cst_18 = arith.constant 2.000000e-01 : f32
    %34 = vector.broadcast %cst_18 : f32 to vector<16x16xf32>
    %35 = arith.mulf %34, %31 : vector<16x16xf32>
    %36 = arith.select %33, %31, %35 : vector<16x16xi1>, vector<16x16xf32>
    %cst_19 = arith.constant -1.000000e+09 : f32
    %37 = vector.broadcast %cst_19 : f32 to vector<16x16xf32>
    %38 = arith.select %5, %36, %37 : vector<16x16xi1>, vector<16x16xf32>
    %cst_20 = arith.constant dense<0xFF800000> : vector<16xf32>
    %39 = vector.multi_reduction <maximumf>, %38, %cst_20 [1] : vector<16x16xf32> to vector<16xf32>
    %40 = vector.shape_cast %39 : vector<16xf32> to vector<16x1xf32>
    %41 = vector.broadcast %40 : vector<16x1xf32> to vector<16x16xf32>
    %42 = arith.subf %36, %41 : vector<16x16xf32>
    %43 = math.exp %42 : vector<16x16xf32>
    %cst_21 = arith.constant 0.000000e+00 : f32
    %44 = vector.broadcast %cst_21 : f32 to vector<16x16xf32>
    %45 = arith.select %5, %43, %44 : vector<16x16xi1>, vector<16x16xf32>
    %cst_22 = arith.constant dense<0.000000e+00> : vector<16xf32>
    %46 = vector.multi_reduction <add>, %45, %cst_22 [1] : vector<16x16xf32> to vector<16xf32>
    %47 = vector.shape_cast %46 : vector<16xf32> to vector<16x1xf32>
    %cst_23 = arith.constant dense<0.000000e+00> : vector<16x32xf32>
    %48 = tpu.matmul %45, %23, %cst_23 {dimension_numbers = #tpu.dot_dimension_numbers<[1], [0], [0], [1], [0, 0, 1, 1], [], []>} : vector<16x16xf32>, vector<16x32xf32>, vector<16x32xf32> -> vector<16x32xf32>
    %cst_24 = arith.constant 9.99999971E-10 : f32
    %49 = vector.broadcast %cst_24 : f32 to vector<16x1xf32>
    %50 = arith.addf %47, %49 : vector<16x1xf32>
    %51 = vector.broadcast %50 : vector<16x1xf32> to vector<16x32xf32>
    %52 = arith.divf %48, %51 : vector<16x32xf32>
    %53 = vector.broadcast %6 : vector<1x32xf32> to vector<16x32xf32>
    %54 = arith.mulf %52, %53 : vector<16x32xf32>
    %cst_25 = arith.constant dense<0.000000e+00> : vector<16x96xf32>
    %55 = tpu.matmul %54, %15, %cst_25 {dimension_numbers = #tpu.dot_dimension_numbers<[1], [0], [0], [1], [0, 0, 1, 1], [], []>} : vector<16x32xf32>, vector<32x96xf32>, vector<16x96xf32> -> vector<16x96xf32>
    %56 = vector.broadcast %18 : vector<1x96xf32> to vector<16x96xf32>
    %57 = arith.addf %55, %56 : vector<16x96xf32>
    %58 = vector.extract_strided_slice %57 {offsets = [0, 0], sizes = [16, 32], strides = [1, 1]} : vector<16x96xf32> to vector<16x32xf32>
    %59 = arith.addf %58, %24 : vector<16x32xf32>
    %60 = arith.negf %59 : vector<16x32xf32>
    %61 = math.exp %60 : vector<16x32xf32>
    %cst_26 = arith.constant 1.000000e+00 : f32
    %62 = vector.broadcast %cst_26 : f32 to vector<16x32xf32>
    %63 = arith.addf %62, %61 : vector<16x32xf32>
    %64 = arith.divf %62, %63 : vector<16x32xf32>
    %65 = vector.extract_strided_slice %57 {offsets = [0, 32], sizes = [16, 32], strides = [1, 1]} : vector<16x96xf32> to vector<16x32xf32>
    %66 = arith.addf %65, %25 : vector<16x32xf32>
    %67 = arith.negf %66 : vector<16x32xf32>
    %68 = math.exp %67 : vector<16x32xf32>
    %cst_27 = arith.constant 1.000000e+00 : f32
    %69 = vector.broadcast %cst_27 : f32 to vector<16x32xf32>
    %70 = arith.addf %69, %68 : vector<16x32xf32>
    %71 = arith.divf %69, %70 : vector<16x32xf32>
    %72 = vector.extract_strided_slice %57 {offsets = [0, 64], sizes = [16, 32], strides = [1, 1]} : vector<16x96xf32> to vector<16x32xf32>
    %73 = arith.mulf %71, %1 : vector<16x32xf32>
    %cst_28 = arith.constant dense<0.000000e+00> : vector<16x32xf32>
    %74 = tpu.matmul %73, %21, %cst_28 {dimension_numbers = #tpu.dot_dimension_numbers<[1], [0], [0], [1], [0, 0, 1, 1], [], []>} : vector<16x32xf32>, vector<32x32xf32>, vector<16x32xf32> -> vector<16x32xf32>
    %75 = arith.addf %72, %74 : vector<16x32xf32>
    %76 = math.tanh %75 : vector<16x32xf32>
    %cst_29 = arith.constant 1.000000e+00 : f32
    %77 = vector.broadcast %cst_29 : f32 to vector<16x32xf32>
    %78 = arith.subf %77, %64 : vector<16x32xf32>
    %79 = arith.mulf %78, %76 : vector<16x32xf32>
    %80 = arith.mulf %64, %1 : vector<16x32xf32>
    %81 = arith.addf %79, %80 : vector<16x32xf32>
    %c1_i32 = arith.constant 1 : i32
    %82 = arith.index_cast %c1_i32 : i32 to index
    %83 = memref.load %arg1[%82] : memref<2xi32, #tpu.memory_space<smem>>
    %84 = arith.index_cast %83 : i32 to index
    %c0_30 = arith.constant 0 : index
    %c0_31 = arith.constant 0 : index
    %85 = vector.load %arg4[%84, %c0_30, %c0_31] : memref<2x32x128xf32, #tpu.memory_space<vmem>>, vector<1x32x128xf32>
    %86 = vector.shape_cast %85 : vector<1x32x128xf32> to vector<32x128xf32>
    %87 = arith.index_cast %83 : i32 to index
    %c0_32 = arith.constant 0 : index
    %c0_33 = arith.constant 0 : index
    %88 = vector.load %arg5[%87, %c0_32, %c0_33] : memref<2x32x96xf32, #tpu.memory_space<vmem>>, vector<1x32x96xf32>
    %89 = vector.shape_cast %88 : vector<1x32x96xf32> to vector<32x96xf32>
    %90 = arith.index_cast %83 : i32 to index
    %c0_34 = arith.constant 0 : index
    %c0_35 = arith.constant 0 : index
    %91 = vector.load %arg6[%90, %c0_34, %c0_35] : memref<2x1x96xf32, #tpu.memory_space<vmem>>, vector<1x1x96xf32>
    %92 = vector.shape_cast %91 : vector<1x1x96xf32> to vector<1x96xf32>
    %93 = arith.index_cast %83 : i32 to index
    %c0_36 = arith.constant 0 : index
    %c0_37 = arith.constant 0 : index
    %94 = vector.load %arg7[%93, %c0_36, %c0_37] : memref<2x32x32xf32, #tpu.memory_space<vmem>>, vector<1x32x32xf32>
    %95 = vector.shape_cast %94 : vector<1x32x32xf32> to vector<32x32xf32>
    %cst_38 = arith.constant dense<0.000000e+00> : vector<16x128xf32>
    %96 = tpu.matmul %81, %86, %cst_38 {dimension_numbers = #tpu.dot_dimension_numbers<[1], [0], [0], [1], [0, 0, 1, 1], [], []>} : vector<16x32xf32>, vector<32x128xf32>, vector<16x128xf32> -> vector<16x128xf32>
    %97 = vector.extract_strided_slice %96 {offsets = [0, 0], sizes = [16, 32], strides = [1, 1]} : vector<16x128xf32> to vector<16x32xf32>
    %98 = vector.extract_strided_slice %96 {offsets = [0, 32], sizes = [16, 32], strides = [1, 1]} : vector<16x128xf32> to vector<16x32xf32>
    %99 = vector.extract_strided_slice %96 {offsets = [0, 64], sizes = [16, 32], strides = [1, 1]} : vector<16x128xf32> to vector<16x32xf32>
    %100 = vector.extract_strided_slice %96 {offsets = [0, 96], sizes = [16, 1], strides = [1, 1]} : vector<16x128xf32> to vector<16x1xf32>
    %101 = vector.extract_strided_slice %96 {offsets = [0, 97], sizes = [16, 1], strides = [1, 1]} : vector<16x128xf32> to vector<16x1xf32>
    %102 = tpu.transpose %101, [1, 0] : vector<16x1xf32> -> vector<1x16xf32>
    %103 = vector.broadcast %100 : vector<16x1xf32> to vector<16x16xf32>
    %104 = vector.broadcast %102 : vector<1x16xf32> to vector<16x16xf32>
    %105 = arith.addf %103, %104 : vector<16x16xf32>
    %cst_39 = arith.constant 0.000000e+00 : f32
    %106 = vector.broadcast %cst_39 : f32 to vector<16x16xf32>
    %107 = arith.cmpf ogt, %105, %106 : vector<16x16xf32>
    %cst_40 = arith.constant 2.000000e-01 : f32
    %108 = vector.broadcast %cst_40 : f32 to vector<16x16xf32>
    %109 = arith.mulf %108, %105 : vector<16x16xf32>
    %110 = arith.select %107, %105, %109 : vector<16x16xi1>, vector<16x16xf32>
    %cst_41 = arith.constant -1.000000e+09 : f32
    %111 = vector.broadcast %cst_41 : f32 to vector<16x16xf32>
    %112 = arith.select %5, %110, %111 : vector<16x16xi1>, vector<16x16xf32>
    %cst_42 = arith.constant dense<0xFF800000> : vector<16xf32>
    %113 = vector.multi_reduction <maximumf>, %112, %cst_42 [1] : vector<16x16xf32> to vector<16xf32>
    %114 = vector.shape_cast %113 : vector<16xf32> to vector<16x1xf32>
    %115 = vector.broadcast %114 : vector<16x1xf32> to vector<16x16xf32>
    %116 = arith.subf %110, %115 : vector<16x16xf32>
    %117 = math.exp %116 : vector<16x16xf32>
    %cst_43 = arith.constant 0.000000e+00 : f32
    %118 = vector.broadcast %cst_43 : f32 to vector<16x16xf32>
    %119 = arith.select %5, %117, %118 : vector<16x16xi1>, vector<16x16xf32>
    %cst_44 = arith.constant dense<0.000000e+00> : vector<16xf32>
    %120 = vector.multi_reduction <add>, %119, %cst_44 [1] : vector<16x16xf32> to vector<16xf32>
    %121 = vector.shape_cast %120 : vector<16xf32> to vector<16x1xf32>
    %cst_45 = arith.constant dense<0.000000e+00> : vector<16x32xf32>
    %122 = tpu.matmul %119, %97, %cst_45 {dimension_numbers = #tpu.dot_dimension_numbers<[1], [0], [0], [1], [0, 0, 1, 1], [], []>} : vector<16x16xf32>, vector<16x32xf32>, vector<16x32xf32> -> vector<16x32xf32>
    %cst_46 = arith.constant 9.99999971E-10 : f32
    %123 = vector.broadcast %cst_46 : f32 to vector<16x1xf32>
    %124 = arith.addf %121, %123 : vector<16x1xf32>
    %125 = vector.broadcast %124 : vector<16x1xf32> to vector<16x32xf32>
    %126 = arith.divf %122, %125 : vector<16x32xf32>
    %127 = vector.broadcast %6 : vector<1x32xf32> to vector<16x32xf32>
    %128 = arith.mulf %126, %127 : vector<16x32xf32>
    %cst_47 = arith.constant dense<0.000000e+00> : vector<16x96xf32>
    %129 = tpu.matmul %128, %89, %cst_47 {dimension_numbers = #tpu.dot_dimension_numbers<[1], [0], [0], [1], [0, 0, 1, 1], [], []>} : vector<16x32xf32>, vector<32x96xf32>, vector<16x96xf32> -> vector<16x96xf32>
    %130 = vector.broadcast %92 : vector<1x96xf32> to vector<16x96xf32>
    %131 = arith.addf %129, %130 : vector<16x96xf32>
    %132 = vector.extract_strided_slice %131 {offsets = [0, 0], sizes = [16, 32], strides = [1, 1]} : vector<16x96xf32> to vector<16x32xf32>
    %133 = arith.addf %132, %98 : vector<16x32xf32>
    %134 = arith.negf %133 : vector<16x32xf32>
    %135 = math.exp %134 : vector<16x32xf32>
    %cst_48 = arith.constant 1.000000e+00 : f32
    %136 = vector.broadcast %cst_48 : f32 to vector<16x32xf32>
    %137 = arith.addf %136, %135 : vector<16x32xf32>
    %138 = arith.divf %136, %137 : vector<16x32xf32>
    %139 = vector.extract_strided_slice %131 {offsets = [0, 32], sizes = [16, 32], strides = [1, 1]} : vector<16x96xf32> to vector<16x32xf32>
    %140 = arith.addf %139, %99 : vector<16x32xf32>
    %141 = arith.negf %140 : vector<16x32xf32>
    %142 = math.exp %141 : vector<16x32xf32>
    %cst_49 = arith.constant 1.000000e+00 : f32
    %143 = vector.broadcast %cst_49 : f32 to vector<16x32xf32>
    %144 = arith.addf %143, %142 : vector<16x32xf32>
    %145 = arith.divf %143, %144 : vector<16x32xf32>
    %146 = vector.extract_strided_slice %131 {offsets = [0, 64], sizes = [16, 32], strides = [1, 1]} : vector<16x96xf32> to vector<16x32xf32>
    %147 = arith.mulf %145, %81 : vector<16x32xf32>
    %cst_50 = arith.constant dense<0.000000e+00> : vector<16x32xf32>
    %148 = tpu.matmul %147, %95, %cst_50 {dimension_numbers = #tpu.dot_dimension_numbers<[1], [0], [0], [1], [0, 0, 1, 1], [], []>} : vector<16x32xf32>, vector<32x32xf32>, vector<16x32xf32> -> vector<16x32xf32>
    %149 = arith.addf %146, %148 : vector<16x32xf32>
    %150 = math.tanh %149 : vector<16x32xf32>
    %cst_51 = arith.constant 1.000000e+00 : f32
    %151 = vector.broadcast %cst_51 : f32 to vector<16x32xf32>
    %152 = arith.subf %151, %138 : vector<16x32xf32>
    %153 = arith.mulf %152, %150 : vector<16x32xf32>
    %154 = arith.mulf %138, %81 : vector<16x32xf32>
    %155 = arith.addf %153, %154 : vector<16x32xf32>
    %c2_i32 = arith.constant 2 : i32
    %c0_52 = arith.constant 0 : index
    %c0_53 = arith.constant 0 : index
    %c0_54 = arith.constant 0 : index
    %156 = vector.load %arg9[%c0_52, %c0_53, %c0_54] : memref<1x16x32xf32, #tpu.memory_space<vmem>>, vector<1x16x32xf32>
    %157 = vector.shape_cast %156 : vector<1x16x32xf32> to vector<16x32xf32>
    %158 = vector.shape_cast %128 : vector<16x32xf32> to vector<1x16x32xf32>
    tpu.vector_store %arg9[%c0_52, %c0_53, %c0_54], %158 {strides = array<i32>} : memref<1x16x32xf32, #tpu.memory_space<vmem>>, vector<1x16x32xf32>,
    %c0_55 = arith.constant 0 : index
    %c0_56 = arith.constant 0 : index
    %c0_57 = arith.constant 0 : index
    %159 = vector.load %arg10[%c0_55, %c0_56, %c0_57] : memref<1x16x32xf32, #tpu.memory_space<vmem>>, vector<1x16x32xf32>
    %160 = vector.shape_cast %159 : vector<1x16x32xf32> to vector<16x32xf32>
    %161 = vector.shape_cast %155 : vector<16x32xf32> to vector<1x16x32xf32>
    tpu.vector_store %arg10[%c0_55, %c0_56, %c0_57], %161 {strides = array<i32>} : memref<1x16x32xf32, #tpu.memory_space<vmem>>, vector<1x16x32xf32>,
    return
  }
  func.func @transform_0(%arg0: i32, %arg1: memref<2xi32, #tpu.memory_space<smem>>) -> (i32, i32, i32) {
    %c0_i32 = arith.constant 0 : i32
    %c0_i32_0 = arith.constant 0 : i32
    %c0_i32_1 = arith.constant 0 : i32
    return %arg0, %c0_i32, %c0_i32_0 : i32, i32, i32
  }
  func.func @transform_1(%arg0: i32, %arg1: memref<2xi32, #tpu.memory_space<smem>>) -> (i32, i32, i32) {
    %c0_i32 = arith.constant 0 : i32
    %c0_i32_0 = arith.constant 0 : i32
    %c0_i32_1 = arith.constant 0 : i32
    return %arg0, %c0_i32, %c0_i32_0 : i32, i32, i32
  }
  func.func @transform_2(%arg0: i32, %arg1: memref<2xi32, #tpu.memory_space<smem>>) -> (i32, i32, i32) {
    %c0_i32 = arith.constant 0 : i32
    %c0_i32_0 = arith.constant 0 : i32
    %c0_i32_1 = arith.constant 0 : i32
    %c0_i32_2 = arith.constant 0 : i32
    return %c0_i32, %c0_i32_0, %c0_i32_1 : i32, i32, i32
  }
  func.func @transform_3(%arg0: i32, %arg1: memref<2xi32, #tpu.memory_space<smem>>) -> (i32, i32, i32) {
    %c0_i32 = arith.constant 0 : i32
    %c0_i32_0 = arith.constant 0 : i32
    %c0_i32_1 = arith.constant 0 : i32
    %c0_i32_2 = arith.constant 0 : i32
    return %c0_i32, %c0_i32_0, %c0_i32_1 : i32, i32, i32
  }
  func.func @transform_4(%arg0: i32, %arg1: memref<2xi32, #tpu.memory_space<smem>>) -> (i32, i32, i32) {
    %c0_i32 = arith.constant 0 : i32
    %c0_i32_0 = arith.constant 0 : i32
    %c0_i32_1 = arith.constant 0 : i32
    %c0_i32_2 = arith.constant 0 : i32
    return %c0_i32, %c0_i32_0, %c0_i32_1 : i32, i32, i32
  }
  func.func @transform_5(%arg0: i32, %arg1: memref<2xi32, #tpu.memory_space<smem>>) -> (i32, i32, i32) {
    %c0_i32 = arith.constant 0 : i32
    %c0_i32_0 = arith.constant 0 : i32
    %c0_i32_1 = arith.constant 0 : i32
    %c0_i32_2 = arith.constant 0 : i32
    return %c0_i32, %c0_i32_0, %c0_i32_1 : i32, i32, i32
  }
  func.func @transform_6(%arg0: i32, %arg1: memref<2xi32, #tpu.memory_space<smem>>) -> (i32, i32) {
    %c0_i32 = arith.constant 0 : i32
    %c0_i32_0 = arith.constant 0 : i32
    %c0_i32_1 = arith.constant 0 : i32
    return %c0_i32, %c0_i32_0 : i32, i32
  }
  func.func @transform_7(%arg0: i32, %arg1: memref<2xi32, #tpu.memory_space<smem>>) -> (i32, i32, i32) {
    %c0_i32 = arith.constant 0 : i32
    %c0_i32_0 = arith.constant 0 : i32
    %c0_i32_1 = arith.constant 0 : i32
    return %arg0, %c0_i32, %c0_i32_0 : i32, i32, i32
  }
  func.func @transform_8(%arg0: i32, %arg1: memref<2xi32, #tpu.memory_space<smem>>) -> (i32, i32, i32) {
    %c0_i32 = arith.constant 0 : i32
    %c0_i32_0 = arith.constant 0 : i32
    %c0_i32_1 = arith.constant 0 : i32
    return %arg0, %c0_i32, %c0_i32_0 : i32, i32, i32
  }
}

</mosaic_0001>

<bundles_post_ra>
// kernel: _rgat_stack_call.1
= control target key start
LH: loop header
LB: loop body
LE: loop exit
PB: predicated region body
PF: predicated region fallthrough
CT: control target
= control target key end

     0   :  { %s2219_s30 = smov [#allocation3]   ;;  %s2741_s0 = inlined_call_operand.hbm [shape: s32[2], index: 0, kind: input, shape index: {}]   ;;  %s2742_s1 = inlined_call_operand.hbm [shape: f32[2,16,32], index: 1, kind: input, shape index: {}]   ;;  %s2743_s2 = inlined_call_operand.hbm [shape: f32[2,16,16], index: 2, kind: input, shape index: {}]   ;;  %s2744_s3 = inlined_call_operand.hbm [shape: f32[2,32,128], index: 3, kind: input, shape index: {}]   ;;  %s2745_s4 = inlined_call_operand.hbm [shape: f32[2,32,96], index: 4, kind: input, shape index: {}]   ;;  %s2746_s5 = inlined_call_operand.vmem [shape: f32[2,1,96], index: 5, kind: input, shape index: {}]   ;;  %s2747_s6 = inlined_call_operand.hbm [shape: f32[2,32,32], index: 6, kind: input, shape index: {}]   ;;  %s2748_s7 = inlined_call_operand.vmem [shape: f32[1,32], index: 7, kind: input, shape index: {}]   ;;  %s2749_s8 = inlined_call_operand.hbm [shape: f32[2,16,32], index: 8, kind: output, shape index: {0}]   ;;  %s2750_s9 = inlined_call_operand.hbm [shape: f32[2,16,32], index: 9, kind: output, shape index: {1}]  }
   0x1   :  { %2761 = sst [smem:[#allocation26_spill]] %s2742_s1 }
   0x2   :  { %2762 = sst [smem:[#allocation27_spill]] %s2744_s3 }
   0x3   :  { %2763 = sst [smem:[#allocation28_spill]] %s2745_s4 }
   0x4   :  { %2764 = sst [smem:[#allocation29_spill]] %s2747_s6 }
   0x5   :  { %16 = dma.hbm_to_smem %s2741_s0, 16, %s2219_s30, [#allocation2] }
   0x6   :  { %2177 = dma.done.wait [#allocation2], 16 }
   0x7   :  { %2178 = vsyncadd [#allocation2], 4294967280 }
   0x8   :  { %18 = sfence }
   0x9   :  { %19 = vsyncpa [#allocation5], 0 }
   0xa   :  { %21 = vsyncpa [#allocation5 + $0x1], 0 }
   0xb   :  { %22 = vsyncpa [#allocation8], 0 }
   0xc   :  { %24 = vsyncpa [#allocation8 + $0x1], 0 }
   0xd   :  { %25 = vsyncpa [#allocation11], 0 }
   0xe   :  { %26 = vsyncpa [#allocation6], 0 }
   0xf   :  { %28 = vsyncpa [#allocation6 + $0x1], 0 }
  0x10   :  { %29 = vsyncpa [#allocation15], 0 }
  0x11   :  { %31 = vsyncpa [#allocation15 + $0x1], 0  ;;  %s2289_s12 = smov 0   ;;  %s2291_s13 = smov 0  }
  0x12   :  { %s2293_s14 = smov 0   ;;  %s2295_s15 = smov 0  }
  0x13 LB: > { %2765 = sst [smem:[#allocation23_spill]] %s2213_s14  ;;  %s2310_s0 = sadd.s32 4294967295, %s2217_s15   ;;  %s2217_s15 = sphi %s2295_s15, %s2788_s15   ;;  %s2213_s14 = sphi %s2293_s14, %s2790_s14   ;;  %s2209_s13 = sphi %s2291_s13, %s2792_s13   ;;  %s2205_s12 = sphi %s2289_s12, %s2791_s12  }
  0x14   : > { %s1645_s16 = sadd.s32 4294967294, %s2217_s15   ;;  %p57_p0 = scmp.ne.s32.totalorder %s2209_s13, %s2205_s12 }
  0x15   : > { %p2751_p1 = scmp.eq.s32.totalorder %s2310_s0, 0  ;;  %p212_p2 = scmp.eq.s32.totalorder %s2310_s0, 1 }
  0x16   : > { %p218_p3 = scmp.eq.s32.totalorder %s1645_s16, 1  ;;  %p1646_p5 = scmp.ge.s32.totalorder %s2217_s15, 1 }
  0x17   : > { %p2319_p4 = por %p2751_p1, %p57_p0  ;;  %p251_p7 = scmp.lt.s32.totalorder %s2217_s15, 3 }
  0x18   : > { %p2324_p6 = por %p218_p3, %p57_p0  ;;  %s2220_s20 = smov [#allocation9]  }
  0x19   : > { %s2766_s17 = scalar_select %p2319_p4, 1, 0 }
  0x1a   : > { %s2767_s18 = scalar_select %p2324_p6, 1, 0 }
  0x1b   : > { %p2329_p8 = pnand %p1646_p5, %p251_p7  ;;  %s263_s21 = sshll.u32 %s2220_s20, 4  ;;  %s264_s21 = int_to_ptr.vmem [resolvable:$true] %s263_s21 }
  0x1c   : > { %s2221_s23 = smov [#allocation10]   ;;  %s2222_s25 = smov [#allocation12]  }
  0x1d   : > { %p1847_p9 = pneg %p2329_p8  ;;  %s276_s24 = sshll.u32 %s2221_s23, 4  ;;  %s277_s24 = int_to_ptr.vmem [resolvable:$true] %s276_s24 }
  0x1e   : > { %s292_s26 = sshll.u32 %s2222_s25, 4  ;;  %s1986_s27 = scalar_lea.vmem %s264_s21, 1024  ;;  %s293_s26 = int_to_ptr.vmem [resolvable:$true] %s292_s26 }
  0x1f   : > { %p2338_p11 = pnand %p1847_p9, %p2751_p1  ;;  %p1987_p13 = scmp.ne.s32.totalorder %s264_s21, %s1986_s27 }
  0x20   : > { %p1994_p5 = scmp.lt.s32.totalorder %s264_s21, %s264_s21  ;;  %p1995_p7 = scmp.lt.s32.totalorder %s1986_s27, %s1986_s27 }
  0x21   : > { %p1977_p12 = pneg %p2338_p11 }
  0x22   : > { %p1996_p9 = por %p1995_p7, %p1994_p5 }
  0x23   : > { %p1989_p0 = pnand %p1987_p13, %p1977_p12 }
  0x25   : > { %p1990_p3 = pneg %p1989_p0 }
  0x27   : > { %p1997_p10 = pnand %p1996_p9, %p1990_p3 }
  0x29   : > { %2000 = shalt.err (!%p1997_p10)
}
  0x2a   : > { %s2752_s28 = smov 128   ;;  %s2754_s29 = smov 8  }
  0x2b   : > { %s2770_s3 = sld [smem:[#allocation27_spill]]  ;;  %s2012_s11 = scalar_lea.vmem %s277_s24, 1024 }
  0x2c   : > { %p2013_p13 = scmp.ne.s32.totalorder %s277_s24, %s2012_s11  ;;  %p2020_p3 = scmp.lt.s32.totalorder %s277_s24, %s277_s24 }
  0x2d   : > { %p2021_p10 = scmp.lt.s32.totalorder %s2012_s11, %s2012_s11 }
  0x2e   : > { %p2015_p0 = pnand %p2013_p13, %p1977_p12 }
  0x2f   : > { %p2022_p7 = por %p2021_p10, %p2020_p3 }
  0x30   : > { %p2016_p5 = pneg %p2015_p0 }
  0x31   : > { %1850 = dma.hbm_to_vmem [thread:$0]  (!%p2338_p11), %s2770_s3, 1024, %s264_s21, [#allocation8], %s2752_s28, %s2752_s28, %s2754_s29  }
  0x32   : > { %p2023_p9 = pnand %p2022_p7, %p2016_p5 }
  0x34   : > { %2026 = shalt.err (!%p2023_p9)
}
  0x35   : > { %s2771_s4 = sld [smem:[#allocation28_spill]]  ;;  %s2038_s21 = scalar_lea.vmem %s293_s26, 1024 }
  0x36   : > { %p2039_p1 = scmp.ne.s32.totalorder %s293_s26, %s2038_s21  ;;  %p2046_p3 = scmp.lt.s32.totalorder %s293_s26, %s293_s26 }
  0x37   : > { %p2047_p5 = scmp.lt.s32.totalorder %s2038_s21, %s2038_s21 }
  0x38   : > { %p2041_p13 = pnand %p2039_p1, %p1977_p12 }
  0x39   : > { %p2048_p10 = por %p2047_p5, %p2046_p3 }
  0x3a   : > { %p2042_p0 = pneg %p2041_p13 }
  0x3b   : > { %1853 = dma.hbm_to_vmem [thread:$0]  (!%p2338_p11), %s2771_s4, 1024, %s277_s24, [#allocation11], %s2752_s28, %s2752_s28, %s2754_s29  }
  0x3c   : > { %p2049_p7 = pnand %p2048_p10, %p2042_p0 }
  0x3e   : > { %2052 = shalt.err (!%p2049_p7)
}
  0x3f   : > { %s2772_s6 = sld [smem:[#allocation29_spill]]  ;;  %s2378_s24 = sadd.s32 1, %s2217_s15  }
  0x40   : > { %2773 = sst [smem:[#allocation24_spill]] %s2378_s24  ;;  %s41_s22 = ssub.s32 %s2217_s15, %s2378_s24 }
  0x41   : > { %s44_s27 = sadd.s32 1, %s2213_s14  ;;  %p42_p1 = scmp.eq.s32.totalorder %s41_s22, 0 }
  0x42   : > { %p51_p12 = scmp.ne.s32.totalorder %s2213_s14, %s2209_s13  ;;  %p52_p9 = scmp.eq.s32.totalorder %s2217_s15, 0 }
  0x43   : > { %p1874_p13 = scmp.lt.s32.totalorder %s2217_s15, 2  ;;  %s309_s11 = sand.u32 1, %s2213_s14  }
  0x44   : > { %s2388_s30 = scalar_select %p42_p1, %s2213_s14, %s44_s27  }
  0x45   : > { %1856 = dma.hbm_to_vmem [thread:$0]  (!%p2338_p11), %s2772_s6, 1024, %s293_s26, [#allocation11], %s2752_s28, %s2752_s28, %s2754_s29  }
  0x46   : > { %2774 = sst [smem:[#allocation25_spill]] %s2388_s30  ;;  %p53_p0 = por %p52_p9, %p51_p12 }
  0x47   : > { %p2392_p3 = por %p212_p2, %p51_p12  ;;  %s1699_s16 = sshll.u32 %s2217_s15, 8 }
  0x48   : > { %s2398_s26 = sshll.u32 %s309_s11, 4  ;;  %s2776_s1 = sld [smem:[#allocation26_spill]] }
  0x49   : > { %s2775_s10 = scalar_select %p2392_p3, 1, 0 }
  0x4a   : > { %s313_s25 = scalar_lea.vmem [#allocation4], %s2398_s26  ;;  %p2406_p11 = pnand %p1874_p13, %p53_p0 }
  0x4b   : > { %s320_s22 = sshll.u32 %s313_s25, 4  ;;  %s2415_s20 = scalar_lea.hbm %s2743_s2, %s1699_s16  ;;  %s2410_s22 = int_to_ptr.vmem [resolvable:$true] %s320_s22 }
  0x4c   : > { %s2417_s21 = scalar_lea.sflag [#allocation5], %s309_s11  ;;  %p2055_p5 = pneg %p2406_p11 }
  0x4e   : > { %s2403_s23 = scalar_lea.hbm %s2776_s1, %s1699_s16  ;;  %s2058_s6 = scalar_lea.hbm %s2776_s1, 512 }
  0x4f   : > { %s2053_s3 = scalar_lea.hbm %s2403_s23, 256  ;;  %p2059_p1 = scmp.lt.s32.totalorder %s2403_s23, %s2776_s1 }
  0x50   : > { %p2054_p2 = scmp.ne.s32.totalorder %s2403_s23, %s2053_s3  ;;  %p2060_p12 = scmp.lt.s32.totalorder %s2058_s6, %s2053_s3 }
  0x52   : > { %p2056_p10 = pnand %p2055_p5, %p2054_p2  ;;  %p2061_p9 = por %p2060_p12, %p2059_p1 }
  0x54   : > { %p2057_p7 = pneg %p2056_p10 }
  0x56   : > { %p2062_p13 = pnand %p2061_p9, %p2057_p7 }
  0x58   : > { %2065 = shalt.err (!%p2062_p13)
}
  0x59   : > { %s2066_s28 = scalar_lea.vmem %s2410_s22, 256  ;;  %s2225_s4 = smov [#allocation4]  }
  0x5a   : > { %p2067_p0 = scmp.ne.s32.totalorder %s2410_s22, %s2066_s28  ;;  %s2071_s29 = sshll.u32 %s2225_s4, 4  ;;  %s2072_s29 = int_to_ptr.vmem [resolvable:$false] %s2071_s29 }
  0x5b   : > { %s2073_s11 = scalar_lea.vmem %s2072_s29, 512  ;;  %p2074_p6 = scmp.lt.s32.totalorder %s2410_s22, %s2072_s29 }
  0x5c   : > { %p2069_p2 = pnand %p2067_p0, %p2055_p5  ;;  %p2075_p3 = scmp.lt.s32.totalorder %s2073_s11, %s2066_s28 }
  0x5e   : > { %p2070_p10 = pneg %p2069_p2  ;;  %p2076_p4 = por %p2075_p3, %p2074_p6 }
  0x60   : > { %p2077_p1 = pnand %p2076_p4, %p2070_p10 }
  0x62   : > { %2080 = shalt.err (!%p2077_p1)
}
  0x63   : > { %s2778_s3 = smov 8   ;;  %s2779_s6 = smov 128  }
  0x64   : > { %1860 = dma.hbm_to_vmem [thread:$0]  (!%p2406_p11), %s2403_s23, 256, %s2410_s22, %s2417_s21, %s2779_s6, %s2779_s6, %s2778_s3  }
  0x65   : > { %s334_s14 = scalar_lea.vmem [#allocation7], %s2398_s26  ;;  %s330_s16 = sand.u32 1, %s2217_s15  }
  0x66   : > { %s341_s30 = sshll.u32 %s334_s14, 4  ;;  %s331_s25 = scalar_lea.sflag [#allocation8], %s330_s16  ;;  %s2449_s30 = int_to_ptr.vmem [resolvable:$true] %s341_s30 }
  0x67   : > { %s2081_s28 = scalar_lea.hbm %s2415_s20, 256  ;;  %s2086_s11 = scalar_lea.hbm %s2743_s2, 512 }
  0x68   : > { %p2082_p4 = scmp.ne.s32.totalorder %s2415_s20, %s2081_s28  ;;  %p2087_p7 = scmp.lt.s32.totalorder %s2415_s20, %s2743_s2 }
  0x69   : > { %p2088_p12 = scmp.lt.s32.totalorder %s2086_s11, %s2081_s28 }
  0x6a   : > { %p2084_p6 = pnand %p2082_p4, %p2055_p5 }
  0x6b   : > { %p2089_p9 = por %p2088_p12, %p2087_p7 }
  0x6c   : > { %p2085_p3 = pneg %p2084_p6 }
  0x6e   : > { %p2090_p13 = pnand %p2089_p9, %p2085_p3 }
  0x70   : > { %2093 = shalt.err (!%p2090_p13)
}
  0x71   : > { %s2094_s26 = scalar_lea.vmem %s2449_s30, 256  ;;  %s2226_s23 = smov [#allocation7]  }
  0x72   : > { %p2095_p0 = scmp.ne.s32.totalorder %s2449_s30, %s2094_s26  ;;  %s2099_s22 = sshll.u32 %s2226_s23, 4  ;;  %s2100_s22 = int_to_ptr.vmem [resolvable:$false] %s2099_s22 }
  0x73   : > { %s2101_s21 = scalar_lea.vmem %s2100_s22, 512  ;;  %p2102_p1 = scmp.lt.s32.totalorder %s2449_s30, %s2100_s22 }
  0x74   : > { %p2097_p2 = pnand %p2095_p0, %p2055_p5  ;;  %p2103_p4 = scmp.lt.s32.totalorder %s2101_s21, %s2094_s26 }
  0x76   : > { %p2098_p10 = pneg %p2097_p2  ;;  %p2104_p6 = por %p2103_p4, %p2102_p1 }
  0x78   : > { %p2105_p7 = pnand %p2104_p6, %p2098_p10 }
  0x7a   : > { %2108 = shalt.err (!%p2105_p7)
}
  0x7b   : > { %1863 = dma.hbm_to_vmem [thread:$0]  (!%p2406_p11), %s2415_s20, 256, %s2449_s30, %s331_s25, %s2779_s6, %s2779_s6, %s2778_s3  }
  0x7c   : > { %353 = sbr.rel (%p2329_p8) target bundleno = 3372 (0xd2c), region = 48  ;;  %s2479_s1 = sand.u32 (!%p2329_p8), 1, %s2209_s13  }
  0x7d   : > { %s2482_s24 = sshll.u32 (!%p2329_p8), %s2479_s1, 4  ;;  %s356_s14 = scalar_lea.sflag (!%p2329_p8), [#allocation5], %s2479_s1 }
  0x7e   : > { %s359_s27 = scalar_lea.vmem (!%p2329_p8), [#allocation4], %s2482_s24  ;;  %p2780_p5 = scmp.ne.s32.totalorder (!%p2329_p8), %s2766_s17, 0 }
  0x81   : > { %2180 = dma.done.wait (%p2780_p5), %s356_s14, 256  }
  0x82   : > { %2182 = vsyncadd (%p2780_p5), %s356_s14, 4294967040  ;;  %s364_s19 = sand.u32 1, %s2310_s0   ;;  %s368_s3 = scalar_lea.vmem [#allocation7], %s2482_s24 }
  0x83   : > { %s365_s20 = scalar_lea.sflag [#allocation8], %s364_s19 }
  0x84   : > { %2184 = dma.done.wait (%p2780_p5), %s365_s20, 256  }
  0x85   : > { %2186 = vsyncadd (%p2780_p5), %s365_s20, 4294967040  ;;  %p2781_p8 = scmp.eq.s32.totalorder %s2310_s0, 0 }
  0x87   : > { %2188 = dma.done.wait (%p2781_p8), [#allocation8], 1024   ;;  %p2782_p11 = pmov %p2781_p8 }
  0x88   : > { %p2783_p3 = pmov %p2781_p8 }
  0x89   : > { %2190 = vsyncadd (%p2782_p11), [#allocation8], 4294966272 }
  0x8a   : > { %2192 = dma.done.wait (%p2783_p3), [#allocation11], 2048   ;;  %p2784_p12 = pmov %p2783_p3 }
  0x8b   : > { %s2504_s6 = sld [smem:[#allocation3]]  ;;  %vm449_vm0 = vcmask 261120   ;;  %v2509_v0 = vld [vmem:[%s359_s27] sm:$0xff]  ;;  %v2514_v5 = vld [vmem:[%s359_s27 + $0x8] sm:$0xff]  ;;  %v2227_v6 = vmov 96   ;;  %s2228_s16 = smov 31   ;;  %v579_v11 = vlaneseq }
  0x8c   : > { %2194 = vsyncadd (%p2784_p12), [#allocation11], 4294965248  ;;  %1755 = vmatprep.mubr.msk.f32.mxu0 %vm449_vm0, %v2509_v0  ;;  %1925 = vset.pattern.permute.xlu1 %v2227_v6  ;;  %v2527_v17 = vld [vmem:[%s368_s3 + $0x8] sm:$0xff]  ;;  %v2531_v18 = vld [vmem:[%s368_s3] sm:$0xff]  ;;  %vm593_vm5 = vcmask 130048   ;;  %s2229_s25 = smov 96  }
  0x8d   : > { %v2520_v12 = vshrl.u32 %v579_v11, 7  ;;  %vm428_vm1 = vcmp.gt.f32.partialorder %v2527_v17, 0.0  ;;  %vm427_vm2 = vcmp.gt.f32.partialorder %v2531_v18, 0.0  ;;  %s2230_s4 = smov 32   ;;  %v2559_v55 = vld [vmem:[%s2748_s7] ss:$0 sm:$0xff] }
  0x8e   : > { %s2231_s14 = smov 64   ;;  %s2576_s27 = sld [smem:[#allocation3 + $0x1]] }
  0x8f   : > { %v581_v14 = vsub.s32 0, %v2520_v12  ;;  %s1441_s23 = scalar_lea.sflag [#allocation6], %s2479_s1  ;;  %p2785_p13 = scmp.ne.s32.totalorder %s2775_s10, 0 }
  0x91   : > { %s2507_s30 = sshll.u32 %s2504_s6, 5  ;;  %s442_s21 = scalar_lea.vmem %s2746_s5, %s2504_s6 }
  0x92   : > { %s432_s17 = scalar_lea.vmem [#allocation9], %s2507_s30  ;;  %s437_s28 = scalar_lea.vmem [#allocation10], %s2507_s30  ;;  %v1671_v62 = vld [vmem:[%s442_s21] ss:$0 sm:$0xff] }
  0x93   : > { %v436_v1 = vld [vmem:[%s432_s17 + $0x18] sm:$0xff]  ;;  %v435_v2 = vld [vmem:[%s432_s17 + $0x10] sm:$0xff]  ;;  %v434_v3 = vld [vmem:[%s432_s17 + $0x8] sm:$0xff]  ;;  %s444_s26 = scalar_lea.vmem [#allocation12], %s2507_s30  ;;  %s2621_s6 = scalar_lea.vmem [#allocation13], %s2482_s24 }
  0x94   : > { %1747 = vmatprep.subr.mxu0 %v436_v1  ;;  %v433_v4 = vld [vmem:[%s432_s17] sm:$0xff]  ;;  %v441_v42 = vld [vmem:[%s437_s28 + $0x18] sm:$0xff]  ;;  %v440_v43 = vld [vmem:[%s437_s28 + $0x10] sm:$0xff]  ;;  %s2579_s19 = sshll.u32 %s2576_s27, 5  ;;  %s2232_s21 = smov [#allocation13]  }
  0x95   : > { %1748 = vmatpush3.msra.mxu0 %v436_v1  ;;  %v439_v44 = vld [vmem:[%s437_s28 + $0x8] sm:$0xff]  ;;  %v438_v45 = vld [vmem:[%s437_s28] sm:$0xff]  ;;  %v448_v59 = vld [vmem:[%s444_s26 + $0x18] sm:$0xff]  ;;  %s939_s20 = scalar_lea.vmem [#allocation9], %s2579_s19  ;;  %s944_s3 = scalar_lea.vmem [#allocation10], %s2579_s19 }
  0x96   : > { %1749 = vmatprep.subr.mxu0 %v435_v2  ;;  %v447_v60 = vld [vmem:[%s444_s26 + $0x10] sm:$0xff]  ;;  %v948_v18 = vld [vmem:[%s944_s3 + $0x18] sm:$0xff]  ;;  %v946_v17 = vld [vmem:[%s944_s3 + $0x8] sm:$0xff]  ;;  %s951_s30 = scalar_lea.vmem [#allocation12], %s2579_s19  ;;  %s949_s28 = scalar_lea.vmem %s2746_s5, %s2576_s27 }
  0x97   : > { %1750 = vmatpush3.msra.mxu0 %v435_v2  ;;  %s2113_s27 = sshll.u32 %s2232_s21, 4  ;;  %s2114_s27 = int_to_ptr.vmem [resolvable:$false] %s2113_s27 }
  0x98   : > { %1751 = vmatprep.subr.mxu0 %v434_v3  ;;  %s2115_s19 = scalar_lea.vmem %s2114_s27, 512 }
  0x99   : > { %1752 = vmatpush3.msra.mxu0 %v434_v3 }
  0x9a   : > { %1753 = vmatprep.subr.mxu0 %v433_v4 }
  0x9b   : > { %1754 = vmatpush3.msra.mxu0 %v433_v4 }
  0x9c   : > { %1756 = vmatmul.mubr.msk.f32.vlgmr.msra.gmra.mxu0 %vm449_vm0, %v2514_v5  ;;  %1776 = vmatprep.subr.mxu0 %v448_v59 }
  0x9d   : > { %1777 = vmatpush3.msra.mxu0 %v448_v59 }
  0x9e   : > { %1778 = vmatprep.subr.mxu0 %v447_v60 }
  0x9f   : > { %1779 = vmatpush3.msra.mxu0 %v447_v60 }
 0x15c   : > { %v1757_v7 = vpop.f32.mrf.mxu0 }
 0x15d   : > { %1758 = vmatprep.subr.mxu1 %v1757_v7 }
 0x15e   : > { %v522_v8 = vpop.f32.mrf.mxu0  ;;  %1759 = vmatpush3.msra.mxu1 %v1757_v7 }
 0x15f   : > { %572 = vperm.xlu1 %1925, %v522_v8   ;;  %533 = vrot.lane.b32.xlu0 %v522_v8, %s2228_s16 }
 0x160   : > { %1760 = vmatprep.subr.mxu1 %v522_v8 }
 0x161   : > { %1761 = vmatpush3.msra.mxu1 %v522_v8 }
 0x162   : > { %1765 = vmatprep.subr.mxu1 %v441_v42 }
 0x163   : > { %576 = vperm.xlu1 %1925, %v1757_v7   ;;  %535 = vrot.lane.b32.xlu0 %v1757_v7, %s2228_s16 }
 0x1d1   : > { %v534_v9 = vpop.permute.xlu0 %533 }
 0x1d2   : > { %539 = vxpose.xlu0.b32.start [1/2] (short) (narrow) %v534_v9, 8 }
 0x1d5   : > { %v536_v10 = vpop.permute.xlu0 %535 }
 0x1d6   : > { %540 = vxpose.xlu0.b32.end [2/2] (short) (narrow) %v536_v10, 8 }
 0x1da   : > { %v573_v13 = vpop.permute.xlu1 %572 }
 0x1de   : > { %v577_v19 = vpop.permute.xlu1 %576 }
 0x1ff   : > { %1926 = vset.pattern.permute.xlu0 %v2227_v6 }
 0x24e   : > { %v555_v15 = vpop.trf.xlu0 }
 0x24f   : > { %v582_v16 = vrot.slane %v555_v15, %v581_v14 }
 0x251   : > { %v583_v20 = vadd.f32 %v582_v16, %v573_v13  ;;  %v584_v21 = vadd.f32 %v582_v16, %v577_v19  ;;  %v446_v16 = vld [vmem:[%s444_s26 + $0x8] sm:$0xff]  ;;  %v445_v19 = vld [vmem:[%s444_s26] sm:$0xff]  ;;  %s1459_s26 = sshll.u32 %s2621_s6, 4  ;;  %s2653_s26 = int_to_ptr.vmem [resolvable:$true] %s1459_s26 }
 0x252   : > { %1780 = vmatprep.subr.mxu0 %v446_v16  ;;  %s2109_s22 = scalar_lea.vmem %s2653_s26, 256  ;;  %p2116_p10 = scmp.lt.s32.totalorder %s2653_s26, %s2114_s27 }
 0x253   : > { %vm586_vm3 = vcmp.gt.f32.partialorder %v584_v21, 0.0  ;;  %v588_v22 = vmul.f32 0.2, %v584_v21  ;;  %vm585_vm4 = vcmp.gt.f32.partialorder %v583_v20, 0.0  ;;  %v587_v23 = vmul.f32 0.2, %v583_v20  ;;  %1781 = vmatpush3.msra.mxu0 %v446_v16  ;;  %p2110_p9 = scmp.ne.s32.totalorder %s2653_s26, %s2109_s22  ;;  %p2117_p1 = scmp.lt.s32.totalorder %s2115_s19, %s2109_s22 }
 0x254   : > { %1782 = vmatprep.subr.mxu0 %v445_v19 }
 0x255   : > { %v590_v24 = vsel %vm586_vm3, %v584_v21, %v588_v22  ;;  %v589_v25 = vsel %vm585_vm4, %v583_v20, %v587_v23  ;;  %1783 = vmatpush3.msra.mxu0 %v445_v19  ;;  %v947_v19 = vld [vmem:[%s944_s3 + $0x10] sm:$0xff]  ;;  %p2111_p0 = pnand %p2110_p9, %p2785_p13  ;;  %p2118_p4 = por %p2117_p1, %p2116_p10 }
 0x256   : > { %v592_v26 = vsel %vm428_vm1, %v590_v24, -1e+09  ;;  %v591_v27 = vsel %vm427_vm2, %v589_v25, -1e+09 }
 0x257   : > { %v597_v28 = vsel %vm593_vm5, %v592_v26, -inf  ;;  %v594_v29 = vsel %vm593_vm5, %v591_v27, -inf  ;;  %p2112_p2 = pneg %p2111_p0 }
 0x258   : > { %598 = vmax.xlane.f32.xlu0 %v597_v28  ;;  %595 = vmax.xlane.f32.xlu1 %v594_v29 }
 0x259   : > { %p2119_p6 = pnand %p2118_p4, %p2112_p2 }
 0x2e1   : > { %v599_v30 = vpop.xlane.xlu0 %598  ;;  %v596_v31 = vpop.xlane.xlu1 %595 }
 0x2e2   : > { %v601_v32 = vsub.f32 %v590_v24, %v599_v30  ;;  %v600_v33 = vsub.f32 %v589_v25, %v596_v31 }
 0x2e4   : > { %v604_v34 = vmul.f32 1.442695, %v601_v32  ;;  %v602_v35 = vmul.f32 1.442695, %v600_v33 }
 0x2e6   : > { %1927 = vpow2.f32 %v604_v34  ;;  %v943_v34 = vld [vmem:[%s939_s20 + $0x18] sm:$0xff] }
 0x2e7   : > { %1929 = vpow2.f32 %v602_v35  ;;  %v942_v35 = vld [vmem:[%s939_s20 + $0x10] sm:$0xff] }
 0x2f3   : > { %v1928_v36 = vpop.eup %1927 }
 0x2f4   : > { %v1930_v37 = vpop.eup %1929  ;;  %v607_v38 = vsel %vm428_vm1, %v1928_v36, 0.0  ;;  %v941_v36 = vld [vmem:[%s939_s20 + $0x8] sm:$0xff] }
 0x2f5   : > { %v606_v39 = vsel %vm427_vm2, %v1930_v37, 0.0  ;;  %v611_v41 = vsel %vm593_vm5, %v607_v38, 0.0  ;;  %v940_v37 = vld [vmem:[%s939_s20] sm:$0xff] }
 0x2f6   : > { %1762 = vmatprep.mubr.msk.f32.mxu1 %vm593_vm5, %v606_v39  ;;  %v608_v40 = vsel %vm593_vm5, %v606_v39, 0.0 }
 0x2f7   : > { %609 = vadd.xlane.f32.xlu1 %v608_v40  ;;  %1763 = vmatmul.mubr.msk.f32.vlgmr.msra.gmra.mxu1 %vm593_vm5, %v607_v38 }
 0x2f8   : > { %1766 = vmatpush3.msra.mxu1 %v441_v42 }
 0x2f9   : > { %1767 = vmatprep.subr.mxu1 %v440_v43 }
 0x2fa   : > { %1768 = vmatpush3.msra.mxu1 %v440_v43 }
 0x2fb   : > { %612 = vadd.xlane.f32.xlu1 %v611_v41  ;;  %1769 = vmatprep.subr.mxu1 %v439_v44 }
 0x2fc   : > { %1770 = vmatpush3.msra.mxu1 %v439_v44 }
 0x2fd   : > { %1771 = vmatprep.subr.mxu1 %v438_v45 }
 0x2fe   : > { %1772 = vmatpush3.msra.mxu1 %v438_v45 }
 0x2ff   : > { %1787 = vmatprep.subr.mxu1 %v943_v34 }
 0x30c   : > { %796 = vrot.lane.b32.xlu1 %v522_v8, %s2229_s25 }
 0x310   : > { %798 = vrot.lane.b32.xlu1 %v1757_v7, %s2229_s25 }
 0x314   : > { %816 = vrot.lane.b32.xlu1 %v2509_v0, %s2230_s4 }
 0x318   : > { %818 = vrot.lane.b32.xlu1 %v2514_v5, %s2230_s4 }
 0x380   : > { %v610_v46 = vpop.xlane.xlu1 %609 }
 0x381   : > { %v695_v49 = vadd.f32 1e-09, %v610_v46 }
 0x384   : > { %v613_v47 = vpop.xlane.xlu1 %612 }
 0x385   : > { %v696_v48 = vadd.f32 1e-09, %v613_v47 }
 0x387   : > { %1931 = vrcp.f32 %v696_v48 }
 0x388   : > { %1933 = vrcp.f32 %v695_v49  ;;  %v797_v61 = vpop.permute.xlu1 %796 }
 0x38c   : > { %v799_v2 = vpop.permute.xlu1 %798 }
 0x390   : > { %v817_v20 = vpop.permute.xlu1 %816 }
 0x394   : > { %v1932_v51 = vpop.eup %1931  ;;  %v819_v24 = vpop.permute.xlu1 %818 }
 0x395   : > { %v1934_v52 = vpop.eup %1933 }
 0x3b7   : > { %v1764_v50 = vpop.f32.mrf.mxu1 }
 0x3b8   : > { %v700_v53 = vmul.f32 %v1932_v51, %v1764_v50 }
 0x3b9   : > { %v686_v54 = vpop.f32.mrf.mxu1 }
 0x3ba   : > { %v698_v56 = vmul.f32 %v1934_v52, %v686_v54  ;;  %v708_v58 = vmul.f32 %v2559_v55, %v700_v53 }
 0x3bc   : > { %v707_v57 = vmul.f32 %v2559_v55, %v698_v56 }
 0x3be   : > { %1773 = vmatprep.mubr.msk.f32.mxu1 %vm449_vm0, %v707_v57 }
 0x3bf   : > { %1774 = vmatmul.mubr.msk.f32.vlgmr.msra.gmra.mxu1 %vm449_vm0, %v708_v58 }
 0x3c0   : > { %1788 = vmatpush3.msra.mxu1 %v943_v34  ;;  %v954_v34 = vld [vmem:[%s951_s30 + $0x10] sm:$0xff] }
 0x3c1   : > { %1789 = vmatprep.subr.mxu1 %v942_v35 }
 0x3c2   : > { %1790 = vmatpush3.msra.mxu1 %v942_v35  ;;  %v953_v35 = vld [vmem:[%s951_s30 + $0x8] sm:$0xff] }
 0x3c3   : > { %1791 = vmatprep.subr.mxu1 %v941_v36 }
 0x3c4   : > { %1792 = vmatpush3.msra.mxu1 %v941_v36 }
 0x3c5   : > { %1793 = vmatprep.subr.mxu1 %v940_v37 }
 0x3c6   : > { %1794 = vmatpush3.msra.mxu1 %v940_v37 }
 0x47f   : > { %v1775_v63 = vpop.f32.mrf.mxu1 }
 0x480   : > { %v793_v1 = vadd.f32 %v1775_v63, %v1671_v62 }
 0x481   : > { %v787_v3 = vpop.f32.mrf.mxu1 }
 0x482   : > { %v803_v4 = vadd.f32 %v799_v2, %v793_v1  ;;  %v788_v6 = vadd.f32 %v1671_v62, %v787_v3 }
 0x484   : > { %v1675_v7 = vmul.f32 -1.442695, %v803_v4  ;;  %v802_v8 = vadd.f32 %v797_v61, %v788_v6 }
 0x486   : > { %1935 = vpow2.f32 %v1675_v7  ;;  %v1674_v9 = vmul.f32 -1.442695, %v802_v8 }
 0x488   : > { %1937 = vpow2.f32 %v1674_v9 }
 0x493   : > { %v1936_v10 = vpop.eup %1935 }
 0x494   : > { %v811_v13 = vadd.f32 1.0, %v1936_v10 }
 0x495   : > { %v1938_v11 = vpop.eup %1937 }
 0x496   : > { %v810_v15 = vadd.f32 1.0, %v1938_v11 }
 0x498   : > { %1939 = vrcp.f32 %v810_v15 }
 0x499   : > { %1941 = vrcp.f32 %v811_v13 }
 0x4a5   : > { %v1940_v21 = vpop.eup %1939 }
 0x4a6   : > { %v822_v22 = vmul.f32 %v1940_v21, %v817_v20  ;;  %v1942_v23 = vpop.eup %1941  ;;  %v921_v40 = vsub.f32 1.0, %v1940_v21  ;;  %v933_v42 = vmul.f32 %v1940_v21, %v2509_v0  ;;  %v945_v20 = vld [vmem:[%s944_s3] sm:$0xff] }
 0x4a7   : > { %v823_v25 = vmul.f32 %v1942_v23, %v819_v24  ;;  %v922_v45 = vsub.f32 1.0, %v1942_v23  ;;  %v934_v47 = vmul.f32 %v1942_v23, %v2514_v5 }
 0x4a8   : > { %826 = vrot.lane.b32.xlu1 %v822_v22, %s2229_s25 }
 0x4ac   : > { %828 = vrot.lane.b32.xlu1 %v823_v25, %s2229_s25 }
 0x51a   : > { %v827_v26 = vpop.permute.xlu1 %826 }
 0x51b   : > { %1784 = vmatprep.mubr.msk.f32.mxu0 %vm449_vm0, %v827_v26 }
 0x51e   : > { %v829_v27 = vpop.permute.xlu1 %828 }
 0x51f   : > { %1785 = vmatmul.mubr.msk.f32.vlgmr.msra.gmra.mxu0 %vm449_vm0, %v829_v27 }
 0x5df   : > { %v1786_v28 = vpop.f32.mrf.mxu0 }
 0x5e0   : > { %913 = vrot.lane.b32.xlu1 %v1786_v28, %s2231_s14 }
 0x5e1   : > { %v900_v29 = vpop.f32.mrf.mxu0 }
 0x5e2   : > { %911 = vrot.lane.b32.xlu0 %v900_v29, %s2231_s14 }
 0x652   : > { %v914_v30 = vpop.permute.xlu1 %913 }
 0x653   : > { %v918_v33 = vadd.f32 %v914_v30, %v793_v1 }
 0x654   : > { %v912_v31 = vpop.permute.xlu0 %911 }
 0x655   : > { %v917_v32 = vadd.f32 %v912_v31, %v788_v6 }
 0x657   : > { %1943 = vtanh.f32 %v917_v32 }
 0x658   : > { %1945 = vtanh.f32 %v918_v33  ;;  %v955_v33 = vld [vmem:[%s951_s30 + $0x18] sm:$0xff] }
 0x659   : > { %1816 = vmatprep.subr.mxu1 %v955_v33 }
 0x664   : > { %v1944_v38 = vpop.eup %1943 }
 0x665   : > { %925 = vrot.lane.b32.xlu1 %v1944_v38, %s2231_s14  ;;  %v1946_v39 = vpop.eup %1945 }
 0x669   : > { %927 = vrot.lane.b32.xlu1 %v1946_v39, %s2231_s14 }
 0x6d7   : > { %v926_v41 = vpop.permute.xlu1 %925 }
 0x6d8   : > { %v931_v43 = vmul.f32 %v926_v41, %v921_v40 }
 0x6da   : > { %v2585_v44 = vadd.f32 %v933_v42, %v931_v43 }
 0x6db   : > { %v928_v46 = vpop.permute.xlu1 %927 }
 0x6dc   : > { %v932_v48 = vmul.f32 %v928_v46, %v922_v45  ;;  %1795 = vmatprep.mubr.msk.f32.mxu1 %vm449_vm0, %v2585_v44 }
 0x6de   : > { %v2590_v49 = vadd.f32 %v934_v47, %v932_v48 }
 0x6e0   : > { %1796 = vmatmul.mubr.msk.f32.vlgmr.msra.gmra.mxu1 %vm449_vm0, %v2590_v49 }
 0x6e1   : > { %1817 = vmatpush3.msra.mxu1 %v955_v33 }
 0x6e2   : > { %1818 = vmatprep.subr.mxu1 %v954_v34 }
 0x6e3   : > { %1819 = vmatpush3.msra.mxu1 %v954_v34 }
 0x6e4   : > { %1820 = vmatprep.subr.mxu1 %v953_v35 }
 0x6e5   : > { %1821 = vmatpush3.msra.mxu1 %v953_v35 }
 0x7a0   : > { %v1797_v50 = vpop.f32.mrf.mxu1 }
 0x7a1   : > { %1798 = vmatprep.subr.mxu0 %v1797_v50 }
 0x7a2   : > { %v1028_v51 = vpop.f32.mrf.mxu1  ;;  %1799 = vmatpush3.msra.mxu0 %v1797_v50 }
 0x7a3   : > { %1078 = vperm.xlu0 %1926, %v1028_v51   ;;  %1039 = vrot.lane.b32.xlu1 %v1028_v51, %s2228_s16 }
 0x7a4   : > { %1800 = vmatprep.subr.mxu0 %v1028_v51 }
 0x7a5   : > { %1801 = vmatpush3.msra.mxu0 %v1028_v51 }
 0x7a6   : > { %1805 = vmatprep.subr.mxu0 %v948_v18 }
 0x7a7   : > { %1041 = vrot.lane.b32.xlu1 %v1797_v50, %s2228_s16 }
 0x7ab   : > { %1082 = vperm.xlu1 %1925, %v1797_v50  }
 0x815   : > { %v1040_v0 = vpop.permute.xlu1 %1039 }
 0x816   : > { %1045 = vxpose.xlu1.b32.start [1/2] (short) (narrow) %v1040_v0, 8  ;;  %v952_v0 = vld [vmem:[%s951_s30] sm:$0xff] }
 0x817   : > { %1822 = vmatprep.subr.mxu1 %v952_v0 }
 0x818   : > { %1823 = vmatpush3.msra.mxu1 %v952_v0 }
 0x819   : > { %v1042_v5 = vpop.permute.xlu1 %1041 }
 0x81a   : > { %1046 = vxpose.xlu1.b32.end [2/2] (short) (narrow) %v1042_v5, 8 }
 0x81e   : > { %v1079_v56 = vpop.permute.xlu0 %1078 }
 0x826   : > { %v1083_v52 = vpop.permute.xlu1 %1082 }
 0x838   : > { %1295 = vrot.lane.b32.xlu1 %v1028_v51, %s2229_s25 }
 0x892   : > { %v1061_v53 = vpop.trf.xlu1 }
 0x893   : > { %v1088_v54 = vrot.slane %v1061_v53, %v581_v14 }
 0x895   : > { %v1089_v57 = vadd.f32 %v1088_v54, %v1079_v56  ;;  %v1090_v58 = vadd.f32 %v1088_v54, %v1083_v52 }
 0x897   : > { %vm1091_vm6 = vcmp.gt.f32.partialorder %v1089_v57, 0.0  ;;  %v1093_v59 = vmul.f32 0.2, %v1089_v57  ;;  %vm1092_vm7 = vcmp.gt.f32.partialorder %v1090_v58, 0.0  ;;  %v1094_v60 = vmul.f32 0.2, %v1090_v58 }
 0x899   : > { %v1095_v61 = vsel %vm1091_vm6, %v1089_v57, %v1093_v59  ;;  %v1096_v62 = vsel %vm1092_vm7, %v1090_v58, %v1094_v60 }
 0x89a   : > { %v1097_v63 = vsel %vm427_vm2, %v1095_v61, -1e+09  ;;  %v1098_v2 = vsel %vm428_vm1, %v1096_v62, -1e+09 }
 0x89b   : > { %v1099_v1 = vsel %vm593_vm5, %v1097_v63, -inf  ;;  %v1102_v12 = vsel %vm593_vm5, %v1098_v2, -inf }
 0x89c   : > { %1100 = vmax.xlane.f32.xlu0 %v1099_v1 }
 0x8a0   : > { %1103 = vmax.xlane.f32.xlu0 %v1102_v12 }
 0x8aa   : > { %v1296_v42 = vpop.permute.xlu1 %1295 }
 0x925   : > { %v1101_v14 = vpop.xlane.xlu0 %1100 }
 0x926   : > { %v1105_v3 = vsub.f32 %v1095_v61, %v1101_v14 }
 0x928   : > { %v1107_v4 = vmul.f32 1.442695, %v1105_v3 }
 0x929   : > { %v1104_v6 = vpop.xlane.xlu0 %1103 }
 0x92a   : > { %1947 = vpow2.f32 %v1107_v4  ;;  %v1106_v7 = vsub.f32 %v1096_v62, %v1104_v6 }
 0x92c   : > { %v1109_v8 = vmul.f32 1.442695, %v1106_v7 }
 0x92e   : > { %1949 = vpow2.f32 %v1109_v8 }
 0x937   : > { %v1948_v9 = vpop.eup %1947 }
 0x938   : > { %v1111_v10 = vsel %vm427_vm2, %v1948_v9, 0.0 }
 0x939   : > { %1802 = vmatprep.mubr.msk.f32.mxu0 %vm593_vm5, %v1111_v10  ;;  %v1113_v11 = vsel %vm593_vm5, %v1111_v10, 0.0 }
 0x93a   : > { %1114 = vadd.xlane.f32.xlu0 %v1113_v11 }
 0x93b   : > { %v1950_v13 = vpop.eup %1949 }
 0x93c   : > { %v1112_v15 = vsel %vm428_vm1, %v1950_v13, 0.0 }
 0x93d   : > { %1803 = vmatmul.mubr.msk.f32.vlgmr.msra.gmra.mxu0 %vm593_vm5, %v1112_v15  ;;  %v1116_v16 = vsel %vm593_vm5, %v1112_v15, 0.0 }
 0x93e   : > { %1117 = vadd.xlane.f32.xlu0 %v1116_v16  ;;  %1806 = vmatpush3.msra.mxu0 %v948_v18 }
 0x93f   : > { %1807 = vmatprep.subr.mxu0 %v947_v19 }
 0x940   : > { %1808 = vmatpush3.msra.mxu0 %v947_v19 }
 0x941   : > { %1809 = vmatprep.subr.mxu0 %v946_v17 }
 0x942   : > { %1810 = vmatpush3.msra.mxu0 %v946_v17 }
 0x943   : > { %1811 = vmatprep.subr.mxu0 %v945_v20 }
 0x944   : > { %1812 = vmatpush3.msra.mxu0 %v945_v20 }
 0x954   : > { %1297 = vrot.lane.b32.xlu0 %v1797_v50, %s2229_s25 }
 0x958   : > { %1315 = vrot.lane.b32.xlu0 %v2585_v44, %s2230_s4 }
 0x95c   : > { %1317 = vrot.lane.b32.xlu0 %v2590_v49, %s2230_s4 }
 0x9c3   : > { %v1115_v21 = vpop.xlane.xlu0 %1114 }
 0x9c4   : > { %v1200_v24 = vadd.f32 1e-09, %v1115_v21 }
 0x9c7   : > { %v1118_v22 = vpop.xlane.xlu0 %1117 }
 0x9c8   : > { %v1201_v23 = vadd.f32 1e-09, %v1118_v22 }
 0x9ca   : > { %1951 = vrcp.f32 %v1201_v23 }
 0x9cb   : > { %1953 = vrcp.f32 %v1200_v24  ;;  %v1298_v38 = vpop.permute.xlu0 %1297 }
 0x9cf   : > { %v1316_v5 = vpop.permute.xlu0 %1315 }
 0x9d3   : > { %v1318_v53 = vpop.permute.xlu0 %1317 }
 0x9d7   : > { %v1952_v25 = vpop.eup %1951 }
 0x9d8   : > { %v1954_v28 = vpop.eup %1953 }
 0x9fd   : > { %v1804_v26 = vpop.f32.mrf.mxu0 }
 0x9fe   : > { %v1205_v27 = vmul.f32 %v1952_v25, %v1804_v26 }
 0x9ff   : > { %v1191_v29 = vpop.f32.mrf.mxu0 }
 0xa00   : > { %v1207_v30 = vmul.f32 %v2559_v55, %v1205_v27  ;;  %v1203_v31 = vmul.f32 %v1954_v28, %v1191_v29 }
 0xa02   : > { %1437 = vst.msk [vmem:[%s2621_s6 + $0x8] sm:$0xff] %vm449_vm0, %v1207_v30  ;;  %v1206_v32 = vmul.f32 %v2559_v55, %v1203_v31  ;;  %v1684_v55 = vld [vmem:[%s949_s28] ss:$0 sm:$0xff] }
 0xa04   : > { %1436 = vst.msk [vmem:[%s2621_s6] sm:$0xff] %vm449_vm0, %v1206_v32  ;;  %1813 = vmatprep.mubr.msk.f32.mxu0 %vm449_vm0, %v1206_v32 }
 0xa05   : > { %1814 = vmatmul.mubr.msk.f32.vlgmr.msra.gmra.mxu0 %vm449_vm0, %v1207_v30 }
 0xac5   : > { %v1815_v36 = vpop.f32.mrf.mxu0 }
 0xac6   : > { %v1292_v37 = vadd.f32 %v1815_v36, %v1684_v55 }
 0xac7   : > { %v1286_v39 = vpop.f32.mrf.mxu0 }
 0xac8   : > { %v1302_v40 = vadd.f32 %v1298_v38, %v1292_v37  ;;  %v1287_v41 = vadd.f32 %v1684_v55, %v1286_v39 }
 0xaca   : > { %v1688_v43 = vmul.f32 -1.442695, %v1302_v40  ;;  %v1301_v45 = vadd.f32 %v1296_v42, %v1287_v41 }
 0xacc   : > { %1955 = vpow2.f32 %v1688_v43  ;;  %v1687_v46 = vmul.f32 -1.442695, %v1301_v45 }
 0xace   : > { %1957 = vpow2.f32 %v1687_v46 }
 0xad9   : > { %v1956_v47 = vpop.eup %1955 }
 0xada   : > { %v1310_v48 = vadd.f32 1.0, %v1956_v47 }
 0xadb   : > { %v1958_v50 = vpop.eup %1957 }
 0xadc   : > { %1959 = vrcp.f32 %v1310_v48  ;;  %v1309_v51 = vadd.f32 1.0, %v1958_v50 }
 0xade   : > { %1961 = vrcp.f32 %v1309_v51 }
 0xae9   : > { %v1960_v52 = vpop.eup %1959 }
 0xaea   : > { %v1322_v54 = vmul.f32 %v1960_v52, %v1318_v53 }
 0xaeb   : > { %v2635_v56 = vpop.eup %1961 }
 0xaec   : > { %1327 = vrot.lane.b32.xlu0 %v1322_v54, %s2229_s25  ;;  %v1321_v57 = vmul.f32 %v2635_v56, %v1316_v5 }
 0xaee   : > { %1325 = vrot.lane.b32.xlu1 %v1321_v57, %s2229_s25  ;;  %s1701_s25 = sshll.u32 %s2310_s0, 8 }
 0xaef   : > { %s2650_s11 = scalar_lea.hbm %s2749_s8, %s1701_s25 }
 0xb5e   : > { %v1328_v59 = vpop.permute.xlu0 %1327 }
 0xb60   : > { %v1326_v58 = vpop.permute.xlu1 %1325 }
 0xb61   : > { %1824 = vmatprep.mubr.msk.f32.mxu1 %vm449_vm0, %v1326_v58 }
 0xb62   : > { %1825 = vmatmul.mubr.msk.f32.vlgmr.msra.gmra.mxu1 %vm449_vm0, %v1328_v59 }
 0xc22   : > { %v1826_v60 = vpop.f32.mrf.mxu1 }
 0xc23   : > { %1412 = vrot.lane.b32.xlu0 %v1826_v60, %s2231_s14 }
 0xc24   : > { %v1399_v61 = vpop.f32.mrf.mxu1 }
 0xc25   : > { %1410 = vrot.lane.b32.xlu1 %v1399_v61, %s2231_s14 }
 0xc95   : > { %v1413_v62 = vpop.permute.xlu0 %1412 }
 0xc96   : > { %v1417_v63 = vadd.f32 %v1413_v62, %v1292_v37 }
 0xc97   : > { %v1411_v1 = vpop.permute.xlu1 %1410 }
 0xc98   : > { %1963 = vtanh.f32 %v1417_v63  ;;  %v1416_v2 = vadd.f32 %v1411_v1, %v1287_v41 }
 0xc9a   : > { %1965 = vtanh.f32 %v1416_v2 }
 0xc9b   : > { %2122 = shalt.err (!%p2119_p6)
}
 0xc9c   : > { %s2123_s20 = scalar_lea.hbm %s2650_s11, 256  ;;  %s2127_s30 = scalar_lea.hbm %s2749_s8, 512 }
 0xc9d   : > { %p2124_p7 = scmp.ne.s32.totalorder %s2650_s11, %s2123_s20  ;;  %p2128_p11 = scmp.lt.s32.totalorder %s2650_s11, %s2749_s8 }
 0xc9e   : > { %p2129_p3 = scmp.lt.s32.totalorder %s2127_s30, %s2123_s20 }
 0xc9f   : > { %p2125_p5 = pnand %p2124_p7, %p2785_p13 }
 0xca0   : > { %p2130_p12 = por %p2129_p3, %p2128_p11 }
 0xca1   : > { %p2126_p8 = pneg %p2125_p5 }
 0xca3   : > { %p2131_p9 = pnand %p2130_p12, %p2126_p8 }
 0xca5   : > { %2134 = shalt.err (!%p2131_p9)
}
 0xca6   : > { %s2233_s28 = smov 128   ;;  %s2234_s4 = smov 8   ;;  %v1964_v12 = vpop.eup %1963  ;;  %v1421_v3 = vsub.f32 1.0, %v1960_v52  ;;  %v1433_v6 = vmul.f32 %v1960_v52, %v2590_v49  ;;  %v1420_v8 = vsub.f32 1.0, %v2635_v56  ;;  %v1432_v11 = vmul.f32 %v2635_v56, %v2585_v44 }
 0xca7   : > { %1843 = dma.vmem_to_hbm [thread:$0]  (%p2785_p13), %s2653_s26, 256, %s2650_s11, %s1441_s23, %s2233_s28, %s2233_s28, %s2234_s4   ;;  %v1966_v14 = vpop.eup %1965 }
 0xca8   : > { %1426 = vrot.lane.b32.xlu0 %v1964_v12, %s2231_s14  ;;  %1424 = vrot.lane.b32.xlu1 %v1966_v14, %s2231_s14  ;;  %s422_s29 = scalar_lea.vmem [#allocation14], %s2482_s24  ;;  %s2694_s26 = scalar_lea.hbm %s2750_s9, %s1701_s25 }
 0xca9   : > { %s1475_s22 = sshll.u32 %s422_s29, 4  ;;  %s1446_s24 = scalar_lea.sflag [#allocation15], %s2479_s1  ;;  %s2696_s22 = int_to_ptr.vmem [resolvable:$true] %s1475_s22 }
 0xcaa   : > { %s2135_s23 = scalar_lea.vmem %s2696_s22, 256  ;;  %s2235_s21 = smov [#allocation14]  }
 0xcab   : > { %p2136_p0 = scmp.ne.s32.totalorder %s2696_s22, %s2135_s23  ;;  %s2139_s0 = sshll.u32 %s2235_s21, 4  ;;  %s2140_s0 = int_to_ptr.vmem [resolvable:$false] %s2139_s0 }
 0xcac   : > { %s2141_s27 = scalar_lea.vmem %s2140_s0, 512  ;;  %p2142_p1 = scmp.lt.s32.totalorder %s2696_s22, %s2140_s0 }
 0xcad   : > { %p2137_p2 = pnand %p2136_p0, %p2785_p13  ;;  %p2143_p4 = scmp.lt.s32.totalorder %s2141_s27, %s2135_s23 }
 0xcaf   : > { %p2138_p10 = pneg %p2137_p2  ;;  %p2144_p6 = por %p2143_p4, %p2142_p1 }
 0xcb1   : > { %p2145_p7 = pnand %p2144_p6, %p2138_p10 }
 0xd1a   : > { %v1427_v4 = vpop.permute.xlu0 %1426  ;;  %v1425_v9 = vpop.permute.xlu1 %1424 }
 0xd1b   : > { %v1431_v7 = vmul.f32 %v1427_v4, %v1421_v3  ;;  %v1430_v13 = vmul.f32 %v1425_v9, %v1420_v8 }
 0xd1d   : > { %v1435_v10 = vadd.f32 %v1433_v6, %v1431_v7  ;;  %v1434_v15 = vadd.f32 %v1432_v11, %v1430_v13 }
 0xd1f   : > { %1439 = vst.msk [vmem:[%s422_s29 + $0x8] sm:$0xff] %vm449_vm0, %v1435_v10  ;;  %1438 = vst.msk [vmem:[%s422_s29] sm:$0xff] %vm449_vm0, %v1434_v15 }
 0xd20   : > { %2148 = shalt.err (!%p2145_p7)
}
 0xd21   : > { %s2149_s25 = scalar_lea.hbm %s2694_s26, 256  ;;  %s2153_s20 = scalar_lea.hbm %s2750_s9, 512 }
 0xd22   : > { %p2150_p5 = scmp.ne.s32.totalorder %s2694_s26, %s2149_s25  ;;  %p2154_p3 = scmp.lt.s32.totalorder %s2694_s26, %s2750_s9 }
 0xd23   : > { %p2155_p12 = scmp.lt.s32.totalorder %s2153_s20, %s2149_s25 }
 0xd24   : > { %p2151_p8 = pnand %p2150_p5, %p2785_p13 }
 0xd25   : > { %p2156_p9 = por %p2155_p12, %p2154_p3 }
 0xd26   : > { %p2152_p11 = pneg %p2151_p8 }
 0xd28   : > { %p2157_p0 = pnand %p2156_p9, %p2152_p11 }
 0xd2a   : > { %2160 = shalt.err (!%p2157_p0)
}
 0xd2b   : > { %1844 = dma.vmem_to_hbm [thread:$0]  (%p2785_p13), %s2696_s22, 256, %s2694_s26, %s1446_s24, %s2233_s28, %s2233_s28, %s2234_s4  }
 0xd2c PF: > { %s1490_s30 = sand.u32 1, %s2205_s12   ;;  %p2786_p2 = scmp.ne.s32.totalorder %s2767_s18, 0 }
 0xd2d   : > { %p2787_p10 = scmp.ge.s32.totalorder %s2217_s15, 2  ;;  %s1491_s17 = scalar_lea.sflag [#allocation6], %s1490_s30 }
 0xd2f   : > { %p1865_p1 = pnand %p2787_p10, %p2786_p2 }
 0xd31   : > { %p1866_p4 = pneg %p1865_p1 }
 0xd33   : > { %2196 = dma.done.wait (%p1866_p4), %s1491_s17, 256  }
 0xd34   : > { %2198 = vsyncadd (%p1866_p4), %s1491_s17, 4294967040  ;;  %s1500_s16 = scalar_lea.sflag [#allocation15], %s1490_s30 }
 0xd35   : > { %2200 = dma.done.wait (%p1866_p4), %s1500_s16, 256  }
 0xd36   : > { %2202 = vsyncadd (%p1866_p4), %s1500_s16, 4294967040  ;;  %s2788_s15 = sld [smem:[#allocation24_spill]]  ;;  %s2791_s12 = smov %s2209_s13 }
 0xd37   : > { %s2789_s10 = sld [smem:[#allocation23_spill]] }
 0xd38   : > { %s2790_s14 = sld [smem:[#allocation25_spill]] }
 0xd3c   : > { %p34_p13 = scmp.ge.s32.totalorder %s2788_s15, 4  }
 0xd3d   : > { %s2792_s13 = smov %s2789_s10 }
 0xd3e   :  { %36 = sbr.rel (!%p34_p13) target bundleno = 19 (0x13), region = 143 }
 0xd43   :  { %1505 = vsyncpa [#allocation5], 1 }
 0xd44   :  { %1507 = vsyncpa [#allocation5 + $0x1], 1 }
 0xd45   :  { %1508 = vsyncpa [#allocation8], 1 }
 0xd46   :  { %1510 = vsyncpa [#allocation8 + $0x1], 1 }
 0xd47   :  { %1511 = vsyncpa [#allocation11], 1 }
 0xd48   :  { %1512 = vsyncpa [#allocation6], 1 }
 0xd49   :  { %1514 = vsyncpa [#allocation6 + $0x1], 1 }
 0xd4a   :  { %1515 = vsyncpa [#allocation15], 1 }
 0xd4b   :  { %1517 = vsyncpa [#allocation15 + $0x1], 1 }

</bundles_post_ra>
